<compile_context>
chip_gen: v7x
topology: tpu7x:2x2x1
jax: 0.10.0
libtpu: 0.0.40
codegen_flags: <defaults>
</compile_context>

<pallas_src>
import functools

import jax
import jax.numpy as jnp
from jax import lax
from jax.experimental import pallas as pl
from jax.experimental.pallas import tpu as pltpu


# -----------------------------------------------------------------------------
# Fused forward kernel:
#   one-hot embedding -> L x (QKV -> block-diag batched causal MHA -> FFN) -> vocab proj
# -----------------------------------------------------------------------------
def _fused_forward_kernel(num_layers, num_heads, head_dim, seq_len,
                          tok_ref,                       # (S, 1)   int32
                          table_ref,                     # (VOCP, E) zero-padded rows
                          wqkv_ref, bqkv_ref,            # (L, E, 3E), (L, 1, 3E)
                          w1_ref, b1_ref,                # (L, E, F),  (L, 1, F)
                          w2_ref, b2_ref,                # (L, F, E),  (L, 1, E)
                          wout_ref,                      # (E, VOC_PAD)
                          out_ref):                      # (S, VOC_PAD)
    S, H, D = seq_len, num_heads, head_dim
    E = H * D
    VOCP = table_ref.shape[0]

    # ---- embedding gather fused in-kernel as a one-hot matmul -------------------
    onehot = jnp.where(
        tok_ref[...] == lax.broadcasted_iota(jnp.int32, (S, VOCP), 1),
        jnp.float32(1.0), jnp.float32(0.0))                               # (S, VOCP)
    x = jnp.dot(onehot, table_ref[...], preferred_element_type=jnp.float32)  # (S, E)

    # ---- constants built ONCE and reused by every layer -------------------------
    # causal mask (torch.triu(ones, diagonal=1) * -1e9), tiled across the H blocks
    row = lax.broadcasted_iota(jnp.int32, (S, S), 0)
    col = lax.broadcasted_iota(jnp.int32, (S, S), 1)
    causal = jnp.where(col > row, jnp.float32(-1e9), jnp.float32(0.0))    # (S, S)
    causal_t = jnp.concatenate([causal] * H, axis=1)                      # (S, H*S)

    # block-diagonal placement mask: element (h*S + s, h'*D + d) True iff h == h'
    # (built from broadcast constants + concat; no integer division needed)
    rowhead = jnp.concatenate(
        [jnp.full((S, E), h, jnp.int32) for h in range(H)], axis=0)       # (H*S, E)
    colhead = jnp.concatenate(
        [jnp.full((H * S, D), h, jnp.int32) for h in range(H)], axis=1)   # (H*S, E)
    blockmask = rowhead == colhead                                        # (H*S, E)
    # 0/1 indicator: P @ ind == per-head softmax row-sums, broadcast over D lanes
    ind = jnp.where(blockmask, jnp.float32(1.0), jnp.float32(0.0))        # (H*S, E)

    for li in range(num_layers):                       # static unroll (L is tiny)
        # Fused QKV projection (1/sqrt(head_dim) folded into the Q columns/bias).
        qkv = jnp.dot(x, wqkv_ref[li],
                      preferred_element_type=jnp.float32) + bqkv_ref[li]  # (S, 3E)
        q = qkv[:, :E]
        k = qkv[:, E:2 * E]
        v = qkv[:, 2 * E:]

        # Block-diagonal K / V: row h*S+s holds K[s]/V[s] restricted to head h's lanes.
        bd_k = jnp.where(blockmask, jnp.concatenate([k] * H, axis=0), 0.0)  # (H*S, E)
        bd_v = jnp.where(blockmask, jnp.concatenate([v] * H, axis=0), 0.0)  # (H*S, E)

        # All-head logits in ONE contraction over E: sim[:, h*S+s] = Q_h . K_h[s]
        sim = lax.dot_general(q, bd_k, (((1,), (1,)), ((), ())),
                              preferred_element_type=jnp.float32)           # (S, H*S)
        sim = sim + causal_t

        # Global per-row max is a valid stabilizer for every head block.
        m = jnp.max(sim, axis=-1, keepdims=True)
        p = jnp.exp(sim - m)                                                # (S, H*S)

        # P @ V (already head-concatenated) and per-head row-sums, each ONE matmul.
        o_un = jnp.dot(p, bd_v, preferred_element_type=jnp.float32)         # (S, E)
        l_sum = jnp.dot(p, ind, preferred_element_type=jnp.float32)         # (S, E)
        # Late normalization: EUP approximate reciprocal on the (S, E) output.
        attn = o_un * pl.reciprocal(l_sum, approx=True)                     # (S, E)

        # Feed-forward.
        h1 = jnp.dot(attn, w1_ref[li],
                     preferred_element_type=jnp.float32) + b1_ref[li]       # (S, F)
        h1 = jnp.maximum(h1, 0.0)
        x = jnp.dot(h1, w2_ref[li],
                    preferred_element_type=jnp.float32) + b2_ref[li]        # (S, E)

    # Lane-dense final vocab projection (W_out zero-padded to 128 lanes).
    out_ref[...] = jnp.dot(x, wout_ref[...], preferred_element_type=jnp.float32)


# -----------------------------------------------------------------------------
# pallas_call wrapper
# -----------------------------------------------------------------------------
def stacked_attention_forward(tokens, packed, num_heads):
    S = tokens.shape[0]
    L, E, _ = packed["wqkv"].shape
    head_dim = E // num_heads
    voc_pad = packed["w_out"].shape[1]
    vocp = packed["emb_table_pad"].shape[0]
    hidden_ff = packed["w1"].shape[2]

    args = (tokens.reshape(S, 1).astype(jnp.int32),
            packed["emb_table_pad"],
            packed["wqkv"], packed["bqkv"],
            packed["w1"], packed["b1"],
            packed["w2"], packed["b2"],
            packed["w_out"])

    flops = (2 * S * vocp * E
             + L * (2 * S * E * 3 * E                       # fused QKV
                    + 3 * 2 * S * E * (num_heads * S)       # logits + P@V + row-sums
                    + 2 * 2 * S * E * hidden_ff)            # FFN
             + 2 * S * E * voc_pad)
    transcendentals = L * (S * num_heads * S + S * E)       # exp + approx reciprocal
    bytes_accessed = (sum(int(a.size) * a.dtype.itemsize for a in args)
                      + S * voc_pad * 4)

    vmem = pl.BlockSpec(memory_space=pltpu.MemorySpace.VMEM)
    out_padded = pl.pallas_call(
        functools.partial(_fused_forward_kernel, L, num_heads, head_dim, S),
        out_shape=jax.ShapeDtypeStruct((S, voc_pad), jnp.float32),
        in_specs=[vmem] * len(args),
        out_specs=vmem,
        cost_estimate=pl.CostEstimate(flops=flops,
                                      transcendentals=transcendentals,
                                      bytes_accessed=bytes_accessed),
    )(*args)
    return out_padded[:, :packed["voc"]]      # slice zero-padded vocab lanes


# -----------------------------------------------------------------------------
# Parameter init (torch-Linear-like uniform(+-1/sqrt(fan_in))) and kernel packing
# -----------------------------------------------------------------------------
def _linear_init(key, fan_in, fan_out, bias=True):
    kw, kb = jax.random.split(key)
    bound = 1.0 / (fan_in ** 0.5)
    w = jax.random.uniform(kw, (fan_in, fan_out), jnp.float32, -bound, bound)
    if not bias:
        return w
    b = jax.random.uniform(kb, (1, fan_out), jnp.float32, -bound, bound)
    return w, b


def init_params(key, voc_size, emb_dim, num_heads, num_layers, hidden_dim_ff):
    keys = jax.random.split(key, 2 + num_layers)
    params = {
        "emb_table": jax.random.normal(keys[0], (voc_size, emb_dim), jnp.float32),
        "w_ffw": _linear_init(keys[1], emb_dim, voc_size, bias=False),
        "layers": [],
    }
    for l in range(num_layers):
        lk = jax.random.split(keys[2 + l], 5)
        wq, bq = _linear_init(lk[0], emb_dim, emb_dim)
        wk, bk = _linear_init(lk[1], emb_dim, emb_dim)
        wv, bv = _linear_init(lk[2], emb_dim, emb_dim)
        w1, b1 = _linear_init(lk[3], emb_dim, hidden_dim_ff)
        w2, b2 = _linear_init(lk[4], hidden_dim_ff, emb_dim)
        params["layers"].append(dict(wq=wq, bq=bq, wk=wk, bk=bk, wv=wv, bv=bv,
                                     w1=w1, b1=b1, w2=w2, b2=b2))
    return params


def pack_params_for_kernel(params, num_heads):
    """Stack per-layer weights, fuse QKV, fold 1/sqrt(head_dim) into W_q/b_q,
    pad the embedding table to 8 sublanes and the output projection to 128 lanes."""
    E = params["emb_table"].shape[1]
    D = E // num_heads
    scale = jnp.float32(1.0 / (D ** 0.5))
    layers = params["layers"]

    wqkv = jnp.stack([jnp.concatenate([lp["wq"] * scale, lp["wk"], lp["wv"]], axis=1)
                      for lp in layers])                                   # (L, E, 3E)
    bqkv = jnp.stack([jnp.concatenate([lp["bq"] * scale, lp["bk"], lp["bv"]], axis=1)
                      for lp in layers])                                   # (L, 1, 3E)
    w1 = jnp.stack([lp["w1"] for lp in layers])                            # (L, E, F)
    b1 = jnp.stack([lp["b1"] for lp in layers])                            # (L, 1, F)
    w2 = jnp.stack([lp["w2"] for lp in layers])                            # (L, F, E)
    b2 = jnp.stack([lp["b2"] for lp in layers])                            # (L, 1, E)

    voc = params["w_ffw"].shape[1]
    voc_pad = ((voc + 127) // 128) * 128
    w_out = jnp.zeros((E, voc_pad), jnp.float32).at[:, :voc].set(params["w_ffw"])

    voc_rows = params["emb_table"].shape[0]
    vocp = ((voc_rows + 7) // 8) * 8
    emb_table_pad = (jnp.zeros((vocp, E), jnp.float32)
                     .at[:voc_rows].set(params["emb_table"]))

    return dict(emb_table_pad=emb_table_pad, wqkv=wqkv, bqkv=bqkv,
                w1=w1, b1=b1, w2=w2, b2=b2, w_out=w_out, voc=voc)


# -----------------------------------------------------------------------------
# Pure-JAX reference (mirrors the PyTorch module) for the correctness check
# -----------------------------------------------------------------------------
def _reference_forward(tokens, params, num_heads):
    emb = params["emb_table"][tokens]
    S, E = emb.shape
    D = E // num_heads
    for lp in params["layers"]:
        q = (emb @ lp["wq"] + lp["bq"]).reshape(S, num_heads, D).transpose(1, 0, 2)
        k = (emb @ lp["wk"] + lp["bk"]).reshape(S, num_heads, D).transpose(1, 0, 2)
        v = (emb @ lp["wv"] + lp["bv"]).reshape(S, num_heads, D).transpose(1, 0, 2)
        sim = jnp.einsum("hqd,hkd->hqk", q, k) / (D ** 0.5)
        mask = jnp.where(jnp.arange(S)[None, :] > jnp.arange(S)[:, None], -1e9, 0.0)
        p = jax.nn.softmax(sim + mask[None], axis=-1)
        attn = jnp.einsum("hqk,hkd->hqd", p, v).transpose(1, 0, 2).reshape(S, E)
        h1 = jnp.maximum(attn @ lp["w1"] + lp["b1"], 0.0)
        emb = h1 @ lp["w2"] + lp["b2"]
    return emb @ params["w_ffw"]


# -----------------------------------------------------------------------------
if __name__ == "__main__":
    # Same token stream as the PyTorch script: ['<s>','A','A','B','B','C','C','<e>'] * 5
    sequence = ["<s>", "A", "A", "B", "B", "C", "C", "<e>"] * 5
    vocab = {"<s>": 0, "A": 1, "B": 2, "C": 3, "<e>": 4}
    tokens = jnp.array([vocab[t] for t in sequence], dtype=jnp.int32)   # (40,)

    voc_size = len(vocab)          # 5
    emb_dim = 32
    num_heads = 4
    num_layers = 2
    hidden_dim_ff = 64

    key = jax.random.PRNGKey(0)
    params = init_params(key, voc_size, emb_dim, num_heads, num_layers, hidden_dim_ff)
    packed = pack_params_for_kernel(params, num_heads)

    out = stacked_attention_forward(tokens, packed, num_heads)
    out = jax.block_until_ready(out)
    assert out.shape == (tokens.shape[0], voc_size), out.shape

    ref = _reference_forward(tokens, params, num_heads)
    # Tolerance accommodates the EUP approx reciprocal in the softmax normalization
    # (everything else is f32-exact math).
    assert jnp.allclose(out, ref, atol=5e-3, rtol=5e-3), (
        f"max abs diff {jnp.max(jnp.abs(out - ref))}")

    print("KERNEL_OK")
</pallas_src>

<mosaic_0001>
module attributes {stable_mosaic.version = 11 : i64} {
  func.func @_fused_forward_kernel(%arg0: memref<40x1xi32, #tpu.memory_space<vmem>>, %arg1: memref<8x32xf32, #tpu.memory_space<vmem>>, %arg2: memref<2x32x96xf32, #tpu.memory_space<vmem>>, %arg3: memref<2x1x96xf32, #tpu.memory_space<vmem>>, %arg4: memref<2x32x64xf32, #tpu.memory_space<vmem>>, %arg5: memref<2x1x64xf32, #tpu.memory_space<vmem>>, %arg6: memref<2x64x32xf32, #tpu.memory_space<vmem>>, %arg7: memref<2x1x32xf32, #tpu.memory_space<vmem>>, %arg8: memref<32x128xf32, #tpu.memory_space<vmem>>, %arg9: memref<40x128xf32, #tpu.memory_space<vmem>>) attributes {dimension_semantics = [], scalar_prefetch = 0 : i64, scratch_operands = 0 : i64, tpu.core_type = #tpu.core_type<tc>} {
    %c0 = arith.constant 0 : index
    %c0_0 = arith.constant 0 : index
    %0 = vector.load %arg0[%c0, %c0_0] : memref<40x1xi32, #tpu.memory_space<vmem>>, vector<40x1xi32>
    %1 = tpu.iota {dimensions = array<i32: 1>} : vector<40x8xi32>
    %2 = vector.broadcast %0 : vector<40x1xi32> to vector<40x8xi32>
    %3 = arith.cmpi eq, %2, %1 : vector<40x8xi32>
    %cst = arith.constant 1.000000e+00 : f32
    %cst_1 = arith.constant 0.000000e+00 : f32
    %4 = vector.broadcast %cst : f32 to vector<40x8xf32>
    %5 = vector.broadcast %cst_1 : f32 to vector<40x8xf32>
    %6 = arith.select %3, %4, %5 : vector<40x8xi1>, vector<40x8xf32>
    %c0_2 = arith.constant 0 : index
    %c0_3 = arith.constant 0 : index
    %7 = vector.load %arg1[%c0_2, %c0_3] : memref<8x32xf32, #tpu.memory_space<vmem>>, vector<8x32xf32>
    %cst_4 = arith.constant dense<0.000000e+00> : vector<40x32xf32>
    %8 = tpu.matmul %6, %7, %cst_4 {dimension_numbers = #tpu.dot_dimension_numbers<[1], [0], [0], [1], [0, 0, 1, 1], [], []>} : vector<40x8xf32>, vector<8x32xf32>, vector<40x32xf32> -> vector<40x32xf32>
    %9 = tpu.iota {dimensions = array<i32: 0>} : vector<40x40xi32>
    %10 = tpu.iota {dimensions = array<i32: 1>} : vector<40x40xi32>
    %11 = arith.cmpi sgt, %10, %9 : vector<40x40xi32>
    %cst_5 = arith.constant -1.000000e+09 : f32
    %cst_6 = arith.constant 0.000000e+00 : f32
    %12 = vector.broadcast %cst_5 : f32 to vector<40x40xf32>
    %13 = vector.broadcast %cst_6 : f32 to vector<40x40xf32>
    %14 = arith.select %11, %12, %13 : vector<40x40xi1>, vector<40x40xf32>
    %15 = tpu.concatenate %14, %14, %14, %14 in 1 : vector<40x40xf32>, vector<40x40xf32>, vector<40x40xf32>, vector<40x40xf32> -> vector<40x160xf32>
    %c0_i32 = arith.constant 0 : i32
    %16 = vector.broadcast %c0_i32 : i32 to vector<40x32xi32>
    %c1_i32 = arith.constant 1 : i32
    %17 = vector.broadcast %c1_i32 : i32 to vector<40x32xi32>
    %c2_i32 = arith.constant 2 : i32
    %18 = vector.broadcast %c2_i32 : i32 to vector<40x32xi32>
    %c3_i32 = arith.constant 3 : i32
    %19 = vector.broadcast %c3_i32 : i32 to vector<40x32xi32>
    %20 = tpu.concatenate %16, %17, %18, %19 in 0 : vector<40x32xi32>, vector<40x32xi32>, vector<40x32xi32>, vector<40x32xi32> -> vector<160x32xi32>
    %c0_i32_7 = arith.constant 0 : i32
    %21 = vector.broadcast %c0_i32_7 : i32 to vector<160x8xi32>
    %c1_i32_8 = arith.constant 1 : i32
    %22 = vector.broadcast %c1_i32_8 : i32 to vector<160x8xi32>
    %c2_i32_9 = arith.constant 2 : i32
    %23 = vector.broadcast %c2_i32_9 : i32 to vector<160x8xi32>
    %c3_i32_10 = arith.constant 3 : i32
    %24 = vector.broadcast %c3_i32_10 : i32 to vector<160x8xi32>
    %25 = tpu.concatenate %21, %22, %23, %24 in 1 : vector<160x8xi32>, vector<160x8xi32>, vector<160x8xi32>, vector<160x8xi32> -> vector<160x32xi32>
    %26 = arith.cmpi eq, %20, %25 : vector<160x32xi32>
    %cst_11 = arith.constant 1.000000e+00 : f32
    %cst_12 = arith.constant 0.000000e+00 : f32
    %27 = vector.broadcast %cst_11 : f32 to vector<160x32xf32>
    %28 = vector.broadcast %cst_12 : f32 to vector<160x32xf32>
    %29 = arith.select %26, %27, %28 : vector<160x32xi1>, vector<160x32xf32>
    %c0_13 = arith.constant 0 : index
    %c0_14 = arith.constant 0 : index
    %c0_15 = arith.constant 0 : index
    %30 = vector.load %arg2[%c0_13, %c0_14, %c0_15] : memref<2x32x96xf32, #tpu.memory_space<vmem>>, vector<1x32x96xf32>
    %31 = vector.shape_cast %30 : vector<1x32x96xf32> to vector<32x96xf32>
    %cst_16 = arith.constant dense<0.000000e+00> : vector<40x96xf32>
    %32 = tpu.matmul %8, %31, %cst_16 {dimension_numbers = #tpu.dot_dimension_numbers<[1], [0], [0], [1], [0, 0, 1, 1], [], []>} : vector<40x32xf32>, vector<32x96xf32>, vector<40x96xf32> -> vector<40x96xf32>
    %c0_17 = arith.constant 0 : index
    %c0_18 = arith.constant 0 : index
    %c0_19 = arith.constant 0 : index
    %33 = vector.load %arg3[%c0_17, %c0_18, %c0_19] : memref<2x1x96xf32, #tpu.memory_space<vmem>>, vector<1x1x96xf32>
    %34 = vector.shape_cast %33 : vector<1x1x96xf32> to vector<1x96xf32>
    %35 = vector.broadcast %34 : vector<1x96xf32> to vector<40x96xf32>
    %36 = arith.addf %32, %35 : vector<40x96xf32>
    %37 = vector.extract_strided_slice %36 {offsets = [0, 0], sizes = [40, 32], strides = [1, 1]} : vector<40x96xf32> to vector<40x32xf32>
    %38 = vector.extract_strided_slice %36 {offsets = [0, 32], sizes = [40, 32], strides = [1, 1]} : vector<40x96xf32> to vector<40x32xf32>
    %39 = vector.extract_strided_slice %36 {offsets = [0, 64], sizes = [40, 32], strides = [1, 1]} : vector<40x96xf32> to vector<40x32xf32>
    %40 = tpu.concatenate %38, %38, %38, %38 in 0 : vector<40x32xf32>, vector<40x32xf32>, vector<40x32xf32>, vector<40x32xf32> -> vector<160x32xf32>
    %cst_20 = arith.constant 0.000000e+00 : f32
    %41 = vector.broadcast %cst_20 : f32 to vector<160x32xf32>
    %42 = arith.select %26, %40, %41 : vector<160x32xi1>, vector<160x32xf32>
    %43 = tpu.concatenate %39, %39, %39, %39 in 0 : vector<40x32xf32>, vector<40x32xf32>, vector<40x32xf32>, vector<40x32xf32> -> vector<160x32xf32>
    %cst_21 = arith.constant 0.000000e+00 : f32
    %44 = vector.broadcast %cst_21 : f32 to vector<160x32xf32>
    %45 = arith.select %26, %43, %44 : vector<160x32xi1>, vector<160x32xf32>
    %cst_22 = arith.constant dense<0.000000e+00> : vector<40x160xf32>
    %46 = tpu.matmul %37, %42, %cst_22 {dimension_numbers = #tpu.dot_dimension_numbers<[1], [1], [0], [0], [0, 0, 1, 0], [], []>} : vector<40x32xf32>, vector<160x32xf32>, vector<40x160xf32> -> vector<40x160xf32>
    %47 = arith.addf %46, %15 : vector<40x160xf32>
    %cst_23 = arith.constant dense<0xFF800000> : vector<40xf32>
    %48 = vector.multi_reduction <maximumf>, %47, %cst_23 [1] : vector<40x160xf32> to vector<40xf32>
    %49 = vector.shape_cast %48 : vector<40xf32> to vector<40x1xf32>
    %50 = vector.broadcast %49 : vector<40x1xf32> to vector<40x160xf32>
    %51 = arith.subf %47, %50 : vector<40x160xf32>
    %52 = math.exp %51 : vector<40x160xf32>
    %cst_24 = arith.constant dense<0.000000e+00> : vector<40x32xf32>
    %53 = tpu.matmul %52, %45, %cst_24 {dimension_numbers = #tpu.dot_dimension_numbers<[1], [0], [0], [1], [0, 0, 1, 1], [], []>} : vector<40x160xf32>, vector<160x32xf32>, vector<40x32xf32> -> vector<40x32xf32>
    %cst_25 = arith.constant dense<0.000000e+00> : vector<40x32xf32>
    %54 = tpu.matmul %52, %29, %cst_25 {dimension_numbers = #tpu.dot_dimension_numbers<[1], [0], [0], [1], [0, 0, 1, 1], [], []>} : vector<40x160xf32>, vector<160x32xf32>, vector<40x32xf32> -> vector<40x32xf32>
    %55 = tpu.reciprocal %54 {approx = true} : vector<40x32xf32> -> vector<40x32xf32>
    %56 = arith.mulf %53, %55 : vector<40x32xf32>
    %c0_26 = arith.constant 0 : index
    %c0_27 = arith.constant 0 : index
    %c0_28 = arith.constant 0 : index
    %57 = vector.load %arg4[%c0_26, %c0_27, %c0_28] : memref<2x32x64xf32, #tpu.memory_space<vmem>>, vector<1x32x64xf32>
    %58 = vector.shape_cast %57 : vector<1x32x64xf32> to vector<32x64xf32>
    %cst_29 = arith.constant dense<0.000000e+00> : vector<40x64xf32>
    %59 = tpu.matmul %56, %58, %cst_29 {dimension_numbers = #tpu.dot_dimension_numbers<[1], [0], [0], [1], [0, 0, 1, 1], [], []>} : vector<40x32xf32>, vector<32x64xf32>, vector<40x64xf32> -> vector<40x64xf32>
    %c0_30 = arith.constant 0 : index
    %c0_31 = arith.constant 0 : index
    %c0_32 = arith.constant 0 : index
    %60 = vector.load %arg5[%c0_30, %c0_31, %c0_32] : memref<2x1x64xf32, #tpu.memory_space<vmem>>, vector<1x1x64xf32>
    %61 = vector.shape_cast %60 : vector<1x1x64xf32> to vector<1x64xf32>
    %62 = vector.broadcast %61 : vector<1x64xf32> to vector<40x64xf32>
    %63 = arith.addf %59, %62 : vector<40x64xf32>
    %cst_33 = arith.constant 0.000000e+00 : f32
    %64 = vector.broadcast %cst_33 : f32 to vector<40x64xf32>
    %65 = arith.maximumf %63, %64 : vector<40x64xf32>
    %c0_34 = arith.constant 0 : index
    %c0_35 = arith.constant 0 : index
    %c0_36 = arith.constant 0 : index
    %66 = vector.load %arg6[%c0_34, %c0_35, %c0_36] : memref<2x64x32xf32, #tpu.memory_space<vmem>>, vector<1x64x32xf32>
    %67 = vector.shape_cast %66 : vector<1x64x32xf32> to vector<64x32xf32>
    %cst_37 = arith.constant dense<0.000000e+00> : vector<40x32xf32>
    %68 = tpu.matmul %65, %67, %cst_37 {dimension_numbers = #tpu.dot_dimension_numbers<[1], [0], [0], [1], [0, 0, 1, 1], [], []>} : vector<40x64xf32>, vector<64x32xf32>, vector<40x32xf32> -> vector<40x32xf32>
    %c0_38 = arith.constant 0 : index
    %c0_39 = arith.constant 0 : index
    %c0_40 = arith.constant 0 : index
    %69 = vector.load %arg7[%c0_38, %c0_39, %c0_40] : memref<2x1x32xf32, #tpu.memory_space<vmem>>, vector<1x1x32xf32>
    %70 = vector.shape_cast %69 : vector<1x1x32xf32> to vector<1x32xf32>
    %71 = vector.broadcast %70 : vector<1x32xf32> to vector<40x32xf32>
    %72 = arith.addf %68, %71 : vector<40x32xf32>
    %c1 = arith.constant 1 : index
    %c0_41 = arith.constant 0 : index
    %c0_42 = arith.constant 0 : index
    %73 = vector.load %arg2[%c1, %c0_41, %c0_42] : memref<2x32x96xf32, #tpu.memory_space<vmem>>, vector<1x32x96xf32>
    %74 = vector.shape_cast %73 : vector<1x32x96xf32> to vector<32x96xf32>
    %cst_43 = arith.constant dense<0.000000e+00> : vector<40x96xf32>
    %75 = tpu.matmul %72, %74, %cst_43 {dimension_numbers = #tpu.dot_dimension_numbers<[1], [0], [0], [1], [0, 0, 1, 1], [], []>} : vector<40x32xf32>, vector<32x96xf32>, vector<40x96xf32> -> vector<40x96xf32>
    %c1_44 = arith.constant 1 : index
    %c0_45 = arith.constant 0 : index
    %c0_46 = arith.constant 0 : index
    %76 = vector.load %arg3[%c1_44, %c0_45, %c0_46] : memref<2x1x96xf32, #tpu.memory_space<vmem>>, vector<1x1x96xf32>
    %77 = vector.shape_cast %76 : vector<1x1x96xf32> to vector<1x96xf32>
    %78 = vector.broadcast %77 : vector<1x96xf32> to vector<40x96xf32>
    %79 = arith.addf %75, %78 : vector<40x96xf32>
    %80 = vector.extract_strided_slice %79 {offsets = [0, 0], sizes = [40, 32], strides = [1, 1]} : vector<40x96xf32> to vector<40x32xf32>
    %81 = vector.extract_strided_slice %79 {offsets = [0, 32], sizes = [40, 32], strides = [1, 1]} : vector<40x96xf32> to vector<40x32xf32>
    %82 = vector.extract_strided_slice %79 {offsets = [0, 64], sizes = [40, 32], strides = [1, 1]} : vector<40x96xf32> to vector<40x32xf32>
    %83 = tpu.concatenate %81, %81, %81, %81 in 0 : vector<40x32xf32>, vector<40x32xf32>, vector<40x32xf32>, vector<40x32xf32> -> vector<160x32xf32>
    %cst_47 = arith.constant 0.000000e+00 : f32
    %84 = vector.broadcast %cst_47 : f32 to vector<160x32xf32>
    %85 = arith.select %26, %83, %84 : vector<160x32xi1>, vector<160x32xf32>
    %86 = tpu.concatenate %82, %82, %82, %82 in 0 : vector<40x32xf32>, vector<40x32xf32>, vector<40x32xf32>, vector<40x32xf32> -> vector<160x32xf32>
    %cst_48 = arith.constant 0.000000e+00 : f32
    %87 = vector.broadcast %cst_48 : f32 to vector<160x32xf32>
    %88 = arith.select %26, %86, %87 : vector<160x32xi1>, vector<160x32xf32>
    %cst_49 = arith.constant dense<0.000000e+00> : vector<40x160xf32>
    %89 = tpu.matmul %80, %85, %cst_49 {dimension_numbers = #tpu.dot_dimension_numbers<[1], [1], [0], [0], [0, 0, 1, 0], [], []>} : vector<40x32xf32>, vector<160x32xf32>, vector<40x160xf32> -> vector<40x160xf32>
    %90 = arith.addf %89, %15 : vector<40x160xf32>
    %cst_50 = arith.constant dense<0xFF800000> : vector<40xf32>
    %91 = vector.multi_reduction <maximumf>, %90, %cst_50 [1] : vector<40x160xf32> to vector<40xf32>
    %92 = vector.shape_cast %91 : vector<40xf32> to vector<40x1xf32>
    %93 = vector.broadcast %92 : vector<40x1xf32> to vector<40x160xf32>
    %94 = arith.subf %90, %93 : vector<40x160xf32>
    %95 = math.exp %94 : vector<40x160xf32>
    %cst_51 = arith.constant dense<0.000000e+00> : vector<40x32xf32>
    %96 = tpu.matmul %95, %88, %cst_51 {dimension_numbers = #tpu.dot_dimension_numbers<[1], [0], [0], [1], [0, 0, 1, 1], [], []>} : vector<40x160xf32>, vector<160x32xf32>, vector<40x32xf32> -> vector<40x32xf32>
    %cst_52 = arith.constant dense<0.000000e+00> : vector<40x32xf32>
    %97 = tpu.matmul %95, %29, %cst_52 {dimension_numbers = #tpu.dot_dimension_numbers<[1], [0], [0], [1], [0, 0, 1, 1], [], []>} : vector<40x160xf32>, vector<160x32xf32>, vector<40x32xf32> -> vector<40x32xf32>
    %98 = tpu.reciprocal %97 {approx = true} : vector<40x32xf32> -> vector<40x32xf32>
    %99 = arith.mulf %96, %98 : vector<40x32xf32>
    %c1_53 = arith.constant 1 : index
    %c0_54 = arith.constant 0 : index
    %c0_55 = arith.constant 0 : index
    %100 = vector.load %arg4[%c1_53, %c0_54, %c0_55] : memref<2x32x64xf32, #tpu.memory_space<vmem>>, vector<1x32x64xf32>
    %101 = vector.shape_cast %100 : vector<1x32x64xf32> to vector<32x64xf32>
    %cst_56 = arith.constant dense<0.000000e+00> : vector<40x64xf32>
    %102 = tpu.matmul %99, %101, %cst_56 {dimension_numbers = #tpu.dot_dimension_numbers<[1], [0], [0], [1], [0, 0, 1, 1], [], []>} : vector<40x32xf32>, vector<32x64xf32>, vector<40x64xf32> -> vector<40x64xf32>
    %c1_57 = arith.constant 1 : index
    %c0_58 = arith.constant 0 : index
    %c0_59 = arith.constant 0 : index
    %103 = vector.load %arg5[%c1_57, %c0_58, %c0_59] : memref<2x1x64xf32, #tpu.memory_space<vmem>>, vector<1x1x64xf32>
    %104 = vector.shape_cast %103 : vector<1x1x64xf32> to vector<1x64xf32>
    %105 = vector.broadcast %104 : vector<1x64xf32> to vector<40x64xf32>
    %106 = arith.addf %102, %105 : vector<40x64xf32>
    %cst_60 = arith.constant 0.000000e+00 : f32
    %107 = vector.broadcast %cst_60 : f32 to vector<40x64xf32>
    %108 = arith.maximumf %106, %107 : vector<40x64xf32>
    %c1_61 = arith.constant 1 : index
    %c0_62 = arith.constant 0 : index
    %c0_63 = arith.constant 0 : index
    %109 = vector.load %arg6[%c1_61, %c0_62, %c0_63] : memref<2x64x32xf32, #tpu.memory_space<vmem>>, vector<1x64x32xf32>
    %110 = vector.shape_cast %109 : vector<1x64x32xf32> to vector<64x32xf32>
    %cst_64 = arith.constant dense<0.000000e+00> : vector<40x32xf32>
    %111 = tpu.matmul %108, %110, %cst_64 {dimension_numbers = #tpu.dot_dimension_numbers<[1], [0], [0], [1], [0, 0, 1, 1], [], []>} : vector<40x64xf32>, vector<64x32xf32>, vector<40x32xf32> -> vector<40x32xf32>
    %c1_65 = arith.constant 1 : index
    %c0_66 = arith.constant 0 : index
    %c0_67 = arith.constant 0 : index
    %112 = vector.load %arg7[%c1_65, %c0_66, %c0_67] : memref<2x1x32xf32, #tpu.memory_space<vmem>>, vector<1x1x32xf32>
    %113 = vector.shape_cast %112 : vector<1x1x32xf32> to vector<1x32xf32>
    %114 = vector.broadcast %113 : vector<1x32xf32> to vector<40x32xf32>
    %115 = arith.addf %111, %114 : vector<40x32xf32>
    %c0_68 = arith.constant 0 : index
    %c0_69 = arith.constant 0 : index
    %116 = vector.load %arg8[%c0_68, %c0_69] : memref<32x128xf32, #tpu.memory_space<vmem>>, vector<32x128xf32>
    %cst_70 = arith.constant dense<0.000000e+00> : vector<40x128xf32>
    %117 = tpu.matmul %115, %116, %cst_70 {dimension_numbers = #tpu.dot_dimension_numbers<[1], [0], [0], [1], [0, 0, 1, 1], [], []>} : vector<40x32xf32>, vector<32x128xf32>, vector<40x128xf32> -> vector<40x128xf32>
    %c0_71 = arith.constant 0 : index
    %c0_72 = arith.constant 0 : index
    %118 = vector.load %arg9[%c0_71, %c0_72] : memref<40x128xf32, #tpu.memory_space<vmem>>, vector<40x128xf32>
    tpu.vector_store %arg9[%c0_71, %c0_72], %117 {strides = array<i32>} : memref<40x128xf32, #tpu.memory_space<vmem>>, vector<40x128xf32>,
    return
  }
}

</mosaic_0001>

<bundles_post_ra>
// kernel: tpu_custom_call.1
= control target key start
LH: loop header
LB: loop body
LE: loop exit
PB: predicated region body
PF: predicated region fallthrough
CT: control target
= control target key end

     0   :  { %v3011_v2 = vmov 0   ;;  %s4007_s0 = inlined_call_operand.vmem [shape: s32[40,1], index: 0, kind: input, shape index: {}]   ;;  %s4008_s1 = inlined_call_operand.vmem [shape: f32[8,32], index: 1, kind: input, shape index: {}]   ;;  %s4009_s2 = inlined_call_operand.vmem [shape: f32[2,32,96], index: 2, kind: input, shape index: {}]   ;;  %s4010_s3 = inlined_call_operand.vmem [shape: f32[2,1,96], index: 3, kind: input, shape index: {}]   ;;  %s4011_s4 = inlined_call_operand.vmem [shape: f32[2,32,64], index: 4, kind: input, shape index: {}]   ;;  %s4012_s5 = inlined_call_operand.vmem [shape: f32[2,1,64], index: 5, kind: input, shape index: {}]   ;;  %s4013_s6 = inlined_call_operand.vmem [shape: f32[2,64,32], index: 6, kind: input, shape index: {}]   ;;  %s4014_s7 = inlined_call_operand.vmem [shape: f32[2,1,32], index: 7, kind: input, shape index: {}]   ;;  %s4015_s8 = inlined_call_operand.vmem [shape: f32[32,128], index: 8, kind: input, shape index: {}]   ;;  %s4016_s9 = inlined_call_operand.hbm [shape: f32[40,128], index: 9, kind: output, shape index: {}]  }
   0x1   :  { %v33_v0 = vld [vmem:[%s4007_s0] sm:$0xff]  ;;  %v35_v1 = vld [vmem:[%s4007_s0 + $0x10] sm:$0xff]  ;;  %2885 = vset.pattern.permute.xlu0 %v3011_v2  ;;  %2886 = vset.pattern.permute.xlu1 %v3011_v2 }
   0x2   :  { %14 = vsyncpa [#allocation3], 0  ;;  %41 = vperm.xlu0 %2885, %v33_v0   ;;  %47 = vperm.xlu1 %2886, %v35_v1   ;;  %v65_v3 = vld [vmem:[%s4008_s1] sm:$0xff]  ;;  %v34_v4 = vld [vmem:[%s4007_s0 + $0x8] sm:$0xff]  ;;  %v3012_v6 = vmov 0.0   ;;  %vm3013_vm0 = vmmov 0   ;;  %v38_v15 = vlaneseq }
   0x3   :  { %v36_v5 = vld [vmem:[%s4007_s0 + $0x18] sm:$0xff]  ;;  %2403 = vmatprep.subr.mxu0 %v3012_v6  ;;  %2405 = vmatprep.mubr.msk.f32.mxu0 %vm3013_vm0, %v3012_v6  ;;  %v37_v7 = vld [vmem:[%s4007_s0 + $0x20] sm:$0xff]  ;;  %v270_v9 = vld [vmem:[%s4009_s2 + $0x8] sm:$0xff]  ;;  %v3014_v11 = vmov 0.0|0.0   ;;  %vm66_vm1 = vcmask 64512   ;;  %vm280_vm7 = vcmask 261120  }
   0x4   :  { %2404 = vmatpush3.msra.mxu0 %v65_v3  ;;  %2428 = vmatprep.mubr.msk.f32.mxu1 %vm3013_vm0, %v3012_v6  ;;  %v269_v8 = vld [vmem:[%s4009_s2] sm:$0xff]  ;;  %v271_v10 = vld [vmem:[%s4009_s2 + $0x10] sm:$0xff]  ;;  %v272_v13 = vld [vmem:[%s4009_s2 + $0x18] sm:$0xff]  ;;  %v3114_v16 = vand.u32 127, %v38_v15  ;;  %s3015_s29 = smov 96   ;;  %v173_v47 = vshrl.u32 %v38_v15, 7 }
   0x5   :  { %2597 = vmatprep.subr.bf16.mxu1 %v3014_v11  ;;  %v2598_v12 = vpack.c.bf16 %v270_v9, %v269_v8  ;;  %2603 = vmatprep.subr.bf16.mxu0 %v3014_v11  ;;  %v2601_v14 = vpack.c.bf16 %v272_v13, %v271_v10  ;;  %v2116_v39 = vld [vmem:[%s4010_s3] ss:$0 sm:$0xff]  ;;  %s3016_s30 = smov 40   ;;  %s3017_s10 = smov 80   ;;  %v3020_v1 = vmov 1   ;;  %vm257_vm13 = vcmask 130048  }
   0x6   :  { %44 = vperm.xlu0 %2885, %v34_v4   ;;  %50 = vperm.xlu1 %2886, %v36_v5   ;;  %vm178_vm8 = vcmp.gt.s32.totalorder %v3114_v16, %v173_v47  ;;  %v174_v56 = vadd.s32 8, %v173_v47  ;;  %v175_v58 = vadd.s32 16, %v173_v47  ;;  %s3018_s11 = smov 120   ;;  %v176_v60 = vadd.s32 24, %v173_v47  ;;  %s3019_s12 = smov 64  }
   0x7   :  { %2599 = vmatpush3.bf16.msra.mxu1 %v2598_v12  ;;  %v3174_v57 = vsel %vm178_vm8, -1e+09, %v3012_v6  ;;  %v177_v62 = vadd.s32 32, %v173_v47  ;;  %v256_v2 = vsel %vm66_vm1, 0, %v3020_v1  ;;  %vm259_vm14 = vcmask 195584  }
   0x8   :  { %2600 = vmatprep.subr.bf16.mxu1 %v3014_v11  ;;  %vm179_vm9 = vcmp.gt.s32.totalorder %v3114_v16, %v174_v56  ;;  %vm180_vm10 = vcmp.gt.s32.totalorder %v3114_v16, %v175_v58  ;;  %vm181_vm11 = vcmp.gt.s32.totalorder %v3114_v16, %v176_v60  ;;  %v258_v3 = vsel %vm257_vm13, %v256_v2, 2 }
   0x9   :  { %v3182_v59 = vsel %vm179_vm9, -1e+09, %v3012_v6  ;;  %v3189_v61 = vsel %vm180_vm10, -1e+09, %v3012_v6  ;;  %v3196_v63 = vsel %vm181_vm11, -1e+09, %v3012_v6  ;;  %vm182_vm12 = vcmp.gt.s32.totalorder %v3114_v16, %v177_v62 }
   0xa   :  { %53 = vperm.xlu0 %2885, %v37_v7   ;;  %v3203_v0 = vsel %vm182_vm12, -1e+09, %v3012_v6  ;;  %v3214_v4 = vsel %vm259_vm14, %v258_v3, 3  ;;  %vm250_vm14 = vcmask 982016  }
   0xb   :  { %2602 = vmatpush3.bf16.msra.mxu1 %v2601_v14  ;;  %vm261_vm15 = vcmp.eq.s32.totalorder %v3214_v4, 0 }
   0xc   :  { %2643 = vmatprep.subr.bf16.mxu1 %v3014_v11  ;;  %vm3337_vm8 = vmpackc.low %vm261_vm15, %vm261_vm15 }
  0x81   :  { %v42_v17 = vpop.permute.xlu0 %41  ;;  %v48_v19 = vpop.permute.xlu1 %47 }
  0x82   :  { %vm55_vm2 = vcmp.eq.s32.totalorder %v42_v17, %v3114_v16  ;;  %vm57_vm3 = vcmp.eq.s32.totalorder %v48_v19, %v3114_v16 }
  0x83   :  { %v60_v18 = vsel %vm55_vm2, 1.0, %v3012_v6  ;;  %v62_v22 = vsel %vm57_vm3, 1.0, %v3012_v6  ;;  %vm264_vm2 = vcmp.eq.s32.totalorder %v3214_v4, 3  ;;  %vm238_vm3 = vcmask 326656  }
  0x84   :  { %2406 = vmatmul.mubr.msk.f32.vlgmr.msra.gmra.mrb[0].mxu0 %vm66_vm1, %v60_v18  ;;  %vm3428_vm13 = vmpackc.low %vm264_vm2, %vm264_vm2 }
  0x85   :  { %v45_v20 = vpop.permute.xlu0 %44  ;;  %2408 = vmatprep.mubr.msk.f32.mxu0 %vm3013_vm0, %v3012_v6  ;;  %v51_v23 = vpop.permute.xlu1 %50 }
  0x86   :  { %vm56_vm4 = vcmp.eq.s32.totalorder %v45_v20, %v3114_v16  ;;  %vm58_vm5 = vcmp.eq.s32.totalorder %v51_v23, %v3114_v16 }
  0x87   :  { %v61_v21 = vsel %vm56_vm4, 1.0, %v3012_v6  ;;  %v63_v25 = vsel %vm58_vm5, 1.0, %v3012_v6  ;;  %vm244_vm4 = vcmask 654336   ;;  %vm262_vm5 = vcmp.eq.s32.totalorder %v3214_v4, 1 }
  0x88   :  { %2409 = vmatmul.mubr.msk.f32.gmra.mrb[2].mxu0 %vm66_vm1, %v61_v21  ;;  %vm3360_vm9 = vmpackc.low %vm262_vm5, %vm261_vm15 }
  0x89   :  { %2411 = vmatprep.mubr.msk.f32.mxu0 %vm3013_vm0, %v3012_v6  ;;  %v54_v24 = vpop.permute.xlu0 %53  ;;  %vm3373_vm10 = vmpackc.low %vm262_vm5, %vm262_vm5 }
  0x8a   :  { %vm59_vm6 = vcmp.eq.s32.totalorder %v54_v24, %v3114_v16 }
  0x8b   :  { %v64_v26 = vsel %vm59_vm6, 1.0, %v3012_v6  ;;  %vm263_vm6 = vcmp.eq.s32.totalorder %v3214_v4, 2 }
  0x8c   :  { %2412 = vmatmul.mubr.msk.f32.gmra.mrb[4].mxu0 %vm66_vm1, %v62_v22  ;;  %vm3395_vm11 = vmpackc.low %vm263_vm6, %vm263_vm6 }
  0x8d   :  { %2414 = vmatprep.mubr.msk.f32.mxu0 %vm3013_vm0, %v3012_v6  ;;  %vm3418_vm12 = vmpackc.low %vm264_vm2, %vm263_vm6 }
  0x90   :  { %2415 = vmatmul.mubr.msk.f32.gmra.mrb[6].mxu0 %vm66_vm1, %v63_v25 }
  0x91   :  { %2417 = vmatprep.mubr.msk.f32.mxu0 %vm3013_vm0, %v3012_v6 }
  0x94   :  { %2418 = vmatmul.mubr.msk.f32.gmra.mrb[8].mxu0 %vm66_vm1, %v64_v26  ;;  %vm3229_vm1 = vmpackc.low %vm280_vm7, %vm280_vm7 }
  0x95   :  { %595 = vmatprep.mubr.f32.mxu0 %v3012_v6 }
 0x157   :  { %v148_v27 = vpop.f32.mrb[0].mxu0 }
 0x158   :  { %v2407_v28 = vpop.f32.mrb[1].mxu0  ;;  %2429 = vmatmul.mubr.msk.f32.vlgmr.msra.gmra.mrb[0].mxu1 %vm280_vm7, %v148_v27 }
 0x159   :  { %2431 = vmatprep.mubr.msk.f32.mxu1 %vm3013_vm0, %v3012_v6 }
 0x15b   :  { %v153_v29 = vpop.f32.mrb[2].mxu0 }
 0x15c   :  { %v2410_v30 = vpop.f32.mrb[3].mxu0  ;;  %2432 = vmatmul.mubr.msk.f32.gmra.mrb[2].mxu1 %vm280_vm7, %v153_v29 }
 0x15d   :  { %2434 = vmatprep.mubr.msk.f32.mxu1 %vm3013_vm0, %v3012_v6 }
 0x15f   :  { %v158_v31 = vpop.f32.mrb[4].mxu0 }
 0x160   :  { %v2413_v32 = vpop.f32.mrb[5].mxu0  ;;  %2435 = vmatmul.mubr.msk.f32.gmra.mrb[4].mxu1 %vm280_vm7, %v158_v31 }
 0x161   :  { %2437 = vmatprep.mubr.msk.f32.mxu1 %vm3013_vm0, %v3012_v6 }
 0x163   :  { %v163_v33 = vpop.f32.mrb[6].mxu0 }
 0x164   :  { %v2416_v34 = vpop.f32.mrb[7].mxu0  ;;  %2438 = vmatmul.mubr.msk.f32.gmra.mrb[6].mxu1 %vm280_vm7, %v163_v33 }
 0x165   :  { %2440 = vmatprep.mubr.msk.f32.mxu1 %vm3013_vm0, %v3012_v6 }
 0x167   :  { %v168_v35 = vpop.f32.mrb[8].mxu0 }
 0x168   :  { %v2419_v36 = vpop.f32.mrb[9].mxu0  ;;  %2441 = vmatmul.mubr.msk.f32.gmra.mrb[8].mxu1 %vm280_vm7, %v168_v35 }
 0x22b   :  { %v362_v37 = vpop.f32.mrb[0].mxu1 }
 0x22c   :  { %v2430_v38 = vpop.f32.mrb[1].mxu1  ;;  %v3156_v41 = vadd.f32 %v2116_v39, %v362_v37 }
 0x22f   :  { %v367_v40 = vpop.f32.mrb[2].mxu1 }
 0x230   :  { %v3158_v42 = vadd.f32 %v2116_v39, %v367_v40  ;;  %v2433_v43 = vpop.f32.mrb[3].mxu1 }
 0x232   :  { %v2887_v44 = vpack.i.bf16 %v3158_v42, %v3156_v41 }
 0x233   :  { %v372_v45 = vpop.f32.mrb[4].mxu1 }
 0x234   :  { %2888 = vrot.lane.b32.xlu1 %v2887_v44, %s3015_s29  ;;  %v2436_v46 = vpop.f32.mrb[5].mxu1  ;;  %v3163_v49 = vadd.f32 %v2116_v39, %v372_v45 }
 0x237   :  { %v377_v48 = vpop.f32.mrb[6].mxu1 }
 0x238   :  { %v3165_v50 = vadd.f32 %v2116_v39, %v377_v48  ;;  %v2439_v51 = vpop.f32.mrb[7].mxu1 }
 0x23a   :  { %v2892_v52 = vpack.i.bf16 %v3165_v50, %v3163_v49 }
 0x23b   :  { %v382_v53 = vpop.f32.mrb[8].mxu1 }
 0x23c   :  { %v3170_v54 = vadd.f32 %v2116_v39, %v382_v53  ;;  %2893 = vrot.lane.b32.xlu0 %v2892_v52, %s3015_s29  ;;  %v2442_v55 = vpop.f32.mrb[9].mxu1 }
 0x23e   :  { %399 = vrot.lane.b32.xlu1 %v3170_v54, %s3015_s29 }
 0x240   :  { %193 = vrot.lane.b32.xlu0 %v3174_v57, %s3016_s30 }
 0x242   :  { %208 = vrot.lane.b32.xlu1 %v3174_v57, %s3017_s10 }
 0x244   :  { %223 = vrot.lane.b32.xlu0 %v3174_v57, %s3018_s11 }
 0x246   :  { %195 = vrot.lane.b32.xlu1 %v3182_v59, %s3016_s30 }
 0x248   :  { %210 = vrot.lane.b32.xlu0 %v3182_v59, %s3017_s10 }
 0x24a   :  { %225 = vrot.lane.b32.xlu1 %v3182_v59, %s3018_s11 }
 0x24c   :  { %197 = vrot.lane.b32.xlu0 %v3189_v61, %s3016_s30 }
 0x24e   :  { %212 = vrot.lane.b32.xlu1 %v3189_v61, %s3017_s10 }
 0x250   :  { %227 = vrot.lane.b32.xlu0 %v3189_v61, %s3018_s11 }
 0x252   :  { %199 = vrot.lane.b32.xlu1 %v3196_v63, %s3016_s30 }
 0x254   :  { %214 = vrot.lane.b32.xlu0 %v3196_v63, %s3017_s10 }
 0x256   :  { %229 = vrot.lane.b32.xlu1 %v3196_v63, %s3018_s11 }
 0x258   :  { %201 = vrot.lane.b32.xlu0 %v3203_v0, %s3016_s30 }
 0x25a   :  { %216 = vrot.lane.b32.xlu1 %v3203_v0, %s3017_s10 }
 0x25c   :  { %231 = vrot.lane.b32.xlu0 %v3203_v0, %s3018_s11 }
 0x25e   :  { %2898 = vrot.lane.b32.xlu1 %v2887_v44, %s3019_s12 }
 0x260   :  { %2903 = vrot.lane.b32.xlu0 %v2892_v52, %s3019_s12 }
 0x262   :  { %434 = vrot.lane.b32.xlu1 %v3170_v54, %s3019_s12 }
 0x2a6   :  { %v2889_v5 = vpop.permute.xlu1 %2888 }
 0x2a7   :  { %v3217_v7 = vunpack.i.h.bf16 %v2889_v5  ;;  %v3219_v8 = vunpack.i.l.bf16 %v2889_v5 }
 0x2a9   :  { %v407_v9 = vsel %vm261_vm15, %v3217_v7, 0.0  ;;  %v406_v10 = vsel %vm261_vm15, %v3219_v8, 0.0  ;;  %v411_v32 = vsel %vm262_vm5, %v3219_v8, 0.0  ;;  %v412_v44 = vsel %vm262_vm5, %v3217_v7, 0.0 }
 0x2aa   :  { %v2604_v13 = vpack.c.bf16 %v407_v9, %v406_v10 }
 0x2ac   :  { %2606 = vmatpush1.bf16.xpose.msk.msra.mxu0 %vm3229_vm1, %v2604_v13 }
 0x2ad   :  { %2607 = vmatprep.subr.bf16.mxu0 %v3014_v11 }
 0x2ae   :  { %v2894_v14 = vpop.permute.xlu0 %2893 }
 0x2af   :  { %v3236_v15 = vunpack.i.h.bf16 %v2894_v14  ;;  %v3238_v16 = vunpack.i.l.bf16 %v2894_v14 }
 0x2b0   :  { %v3240_v17 = vpop.permute.xlu1 %399 }
 0x2b1   :  { %v409_v18 = vsel %vm261_vm15, %v3236_v15, 0.0  ;;  %v408_v19 = vsel %vm261_vm15, %v3238_v16, 0.0  ;;  %v3252_v22 = vsel %vm264_vm2, %v3236_v15, 0.0  ;;  %v3257_v23 = vsel %vm264_vm2, %v3240_v17, 0.0 }
 0x2b2   :  { %v2608_v20 = vpack.c.bf16 %v409_v18, %v408_v19  ;;  %v194_v21 = vpop.permute.xlu0 %193  ;;  %v2640_v25 = vpack.c.bf16 %v3257_v23, %v3252_v22  ;;  %v410_v29 = vsel %vm261_vm15, %v3240_v17, 0.0  ;;  %v413_v39 = vsel %vm262_vm5, %v3238_v16, 0.0 }
 0x2b3   :  { %v239_v26 = vsel %vm238_vm3, %v3174_v57, %v194_v21  ;;  %v2612_v34 = vpack.c.bf16 %v411_v32, %v410_v29  ;;  %v2616_v46 = vpack.c.bf16 %v413_v39, %v412_v44  ;;  %v414_v53 = vsel %vm262_vm5, %v3236_v15, 0.0  ;;  %v2295_v29 = vld [vmem:[%s4011_s4 + $0x20] sm:$0xff] }
 0x2b4   :  { %v209_v24 = vpop.permute.xlu1 %208  ;;  %2610 = vmatpush1.bf16.xpose.msk.msra.mxu0 %vm3229_vm1, %v2608_v20  ;;  %v415_v55 = vsel %vm262_vm5, %v3240_v17, 0.0  ;;  %v419_v19 = vsel %vm263_vm6, %v3236_v15, 0.0  ;;  %v418_v20 = vsel %vm263_vm6, %v3238_v16, 0.0 }
 0x2b5   :  { %2611 = vmatprep.subr.bf16.mxu0 %v3014_v11  ;;  %v3270_v28 = vsel %vm244_vm4, %v239_v26, %v209_v24  ;;  %v2620_v58 = vpack.c.bf16 %v415_v55, %v414_v53  ;;  %v2628_v26 = vpack.c.bf16 %v419_v19, %v418_v20 }
 0x2b6   :  { %v3265_v27 = vpop.permute.xlu0 %223 }
 0x2b8   :  { %v196_v30 = vpop.permute.xlu1 %195 }
 0x2b9   :  { %v240_v31 = vsel %vm238_vm3, %v3182_v59, %v196_v30  ;;  %v2296_v30 = vld [vmem:[%s4011_s4 + $0x28] sm:$0xff] }
 0x2ba   :  { %v211_v33 = vpop.permute.xlu0 %210 }
 0x2bb   :  { %v3281_v35 = vsel %vm244_vm4, %v240_v31, %v211_v33  ;;  %v420_v31 = vsel %vm263_vm6, %v3240_v17, 0.0  ;;  %v421_v33 = vsel %vm264_vm2, %v3219_v8, 0.0  ;;  %v423_v17 = vsel %vm264_vm2, %v3238_v16, 0.0  ;;  %v2298_v16 = vld [vmem:[%s4011_s4 + $0x38] sm:$0xff] }
 0x2bc   :  { %v3283_v36 = vpop.permute.xlu1 %225  ;;  %2614 = vmatpush1.bf16.xpose.msk.msra.mxu0 %vm3229_vm1, %v2612_v34  ;;  %v2632_v34 = vpack.c.bf16 %v421_v33, %v420_v31 }
 0x2bd   :  { %2615 = vmatprep.subr.bf16.mxu0 %v3014_v11  ;;  %v3470_v23 = vsel %vm250_vm14, %v3281_v35, %v3283_v36 }
 0x2be   :  { %v198_v37 = vpop.permute.xlu0 %197 }
 0x2bf   :  { %v241_v38 = vsel %vm238_vm3, %v3189_v61, %v198_v37 }
 0x2c0   :  { %v213_v40 = vpop.permute.xlu1 %212 }
 0x2c1   :  { %v3294_v43 = vsel %vm244_vm4, %v241_v38, %v213_v40  ;;  %v422_v38 = vsel %vm264_vm2, %v3217_v7, 0.0 }
 0x2c2   :  { %v3299_v45 = vpop.permute.xlu0 %227  ;;  %v2636_v39 = vpack.c.bf16 %v423_v17, %v422_v38 }
 0x2c4   :  { %v200_v47 = vpop.permute.xlu1 %199  ;;  %2618 = vmatpush1.bf16.xpose.msk.msra.mxu0 %vm3229_vm1, %v2616_v46 }
 0x2c5   :  { %v242_v48 = vsel %vm238_vm3, %v3196_v63, %v200_v47  ;;  %2619 = vmatprep.subr.bf16.mxu0 %v3014_v11  ;;  %v417_v63 = vsel %vm263_vm6, %v3217_v7, 0.0  ;;  %v3478_v47 = vsel %vm250_vm14, %v3294_v43, %v3299_v45  ;;  %v2297_v7 = vld [vmem:[%s4011_s4 + $0x30] sm:$0xff] }
 0x2c6   :  { %v215_v51 = vpop.permute.xlu0 %214 }
 0x2c7   :  { %v3307_v52 = vsel %vm244_vm4, %v242_v48, %v215_v51 }
 0x2c8   :  { %v3315_v56 = vpop.permute.xlu1 %229 }
 0x2ca   :  { %v202_v57 = vpop.permute.xlu0 %201 }
 0x2cb   :  { %v243_v59 = vsel %vm238_vm3, %v3203_v0, %v202_v57  ;;  %v416_v0 = vsel %vm263_vm6, %v3219_v8, 0.0  ;;  %vm1017_vm3 = vcmask 523264   ;;  %v2848_v8 = vpack.c.bf16 %v2296_v30, %v2295_v29 }
 0x2cc   :  { %v217_v60 = vpop.permute.xlu1 %216  ;;  %2622 = vmatpush1.bf16.xpose.msk.msra.mxu0 %vm3229_vm1, %v2620_v58  ;;  %v2624_v9 = vpack.c.bf16 %v417_v63, %v416_v0  ;;  %v3486_v58 = vsel %vm250_vm14, %v3307_v52, %v3315_v56 }
 0x2cd   :  { %v3321_v61 = vsel %vm244_vm4, %v243_v59, %v217_v60  ;;  %2623 = vmatprep.subr.bf16.mxu0 %v3014_v11 }
 0x2ce   :  { %v3325_v62 = vpop.permute.xlu0 %231 }
 0x2d0   :  { %v2899_v1 = vpop.permute.xlu1 %2898 }
 0x2d1   :  { %v2901_v2 = vunpack.i.h.bf16 %v2899_v1  ;;  %v2900_v3 = vunpack.i.l.bf16 %v2899_v1 }
 0x2d2   :  { %v2904_v5 = vpop.permute.xlu0 %2903 }
 0x2d3   :  { %v2644_v10 = vpack.c.bf16 %v2901_v2, %v2900_v3  ;;  %v2906_v14 = vunpack.i.h.bf16 %v2904_v5  ;;  %v2905_v18 = vunpack.i.l.bf16 %v2904_v5 }
 0x2d4   :  { %2626 = vmatpush1.bf16.xpose.msk.msra.mxu0 %vm3229_vm1, %v2624_v9  ;;  %v435_v24 = vpop.permute.xlu1 %434 }
 0x2d5   :  { %2646 = vmatpush1.bf16.msk.msra.mxu1 %vm3337_vm8, %v2644_v10  ;;  %2627 = vmatprep.subr.bf16.mxu0 %v3014_v11  ;;  %v2648_v21 = vpack.c.bf16 %v2906_v14, %v2905_v18  ;;  %v2652_v15 = vpack.c.bf16 %v2900_v3, %v435_v24  ;;  %v2656_v32 = vpack.c.bf16 %v2905_v18, %v2901_v2 }
 0x2d6   :  { %2647 = vmatprep.subr.bf16.mxu1 %v3014_v11  ;;  %v2660_v37 = vpack.c.bf16 %v435_v24, %v2906_v14  ;;  %v3494_v2 = vsel %vm250_vm14, %v3321_v61, %v3325_v62 }
 0x2d9   :  { %2650 = vmatpush1.bf16.msk.msra.mxu1 %vm3337_vm8, %v2648_v21 }
 0x2da   :  { %2651 = vmatprep.subr.bf16.mxu1 %v3014_v11 }
 0x2dc   :  { %2630 = vmatpush1.bf16.xpose.msk.msra.mxu0 %vm3229_vm1, %v2628_v26 }
 0x2dd   :  { %2654 = vmatpush1.bf16.msk.msra.mxu1 %vm3360_vm9, %v2652_v15  ;;  %2631 = vmatprep.subr.bf16.mxu0 %v3014_v11 }
 0x2de   :  { %2655 = vmatprep.subr.bf16.mxu1 %v3014_v11 }
 0x2e1   :  { %2658 = vmatpush1.bf16.msk.msra.mxu1 %vm3373_vm10, %v2656_v32 }
 0x2e2   :  { %2659 = vmatprep.subr.bf16.mxu1 %v3014_v11 }
 0x2e4   :  { %2634 = vmatpush1.bf16.xpose.msk.msra.mxu0 %vm3229_vm1, %v2632_v34 }
 0x2e5   :  { %2662 = vmatpush1.bf16.msk.msra.mxu1 %vm3373_vm10, %v2660_v37  ;;  %2635 = vmatprep.subr.bf16.mxu0 %v3014_v11 }
 0x2e6   :  { %2663 = vmatprep.subr.bf16.mxu1 %v3014_v11 }
 0x2e9   :  { %2666 = vmatpush1.bf16.msk.msra.mxu1 %vm3395_vm11, %v2644_v10 }
 0x2ea   :  { %2667 = vmatprep.subr.bf16.mxu1 %v3014_v11 }
 0x2ec   :  { %2638 = vmatpush1.bf16.xpose.msk.msra.mxu0 %vm3229_vm1, %v2636_v39 }
 0x2ed   :  { %2670 = vmatpush1.bf16.msk.msra.mxu1 %vm3395_vm11, %v2648_v21  ;;  %2639 = vmatprep.subr.bf16.mxu0 %v3014_v11 }
 0x2ee   :  { %2671 = vmatprep.subr.bf16.mxu1 %v3014_v11 }
 0x2f1   :  { %2674 = vmatpush1.bf16.msk.msra.mxu1 %vm3418_vm12, %v2652_v15 }
 0x2f2   :  { %2675 = vmatprep.subr.bf16.mxu1 %v3014_v11 }
 0x2f4   :  { %2642 = vmatpush1.bf16.xpose.msk.msra.mxu0 %vm3229_vm1, %v2640_v25 }
 0x2f5   :  { %2678 = vmatpush1.bf16.msk.msra.mxu1 %vm3428_vm13, %v2656_v32  ;;  %2713 = vmatprep.subr.bf16.mxu0 %v3014_v11 }
 0x2f6   :  { %2679 = vmatprep.subr.bf16.mxu1 %v3014_v11 }
 0x2f9   :  { %2682 = vmatpush1.bf16.msk.msra.mxu1 %vm3428_vm13, %v2660_v37 }
 0x2fa   :  { %2683 = vmatprep.subr.bf16.mxu1 %v3014_v11 }
 0x2fb   :  { %2142 = vmatmul.mubr.msk.f32.vlgmr.msra.gmra.mrb[10].mxu0 %vm280_vm7, %v3156_v41  ;;  %v3463_v41 = vsel %vm250_vm14, %v3270_v28, %v3265_v27 }
 0x2fc   :  { %601 = vmatprep.mubr.f32.mxu0 %v3012_v6 }
 0x2ff   :  { %2143 = vmatmul.mubr.msk.f32.gmra.mrb[12].mxu0 %vm280_vm7, %v3158_v42 }
 0x300   :  { %607 = vmatprep.mubr.f32.mxu0 %v3012_v6 }
 0x303   :  { %2144 = vmatmul.mubr.msk.f32.gmra.mrb[14].mxu0 %vm280_vm7, %v3163_v49 }
 0x304   :  { %613 = vmatprep.mubr.f32.mxu0 %v3012_v6 }
 0x307   :  { %2145 = vmatmul.mubr.msk.f32.gmra.mrb[16].mxu0 %vm280_vm7, %v3165_v50 }
 0x308   :  { %619 = vmatprep.mubr.f32.mxu0 %v3012_v6 }
 0x30b   :  { %2146 = vmatmul.mubr.msk.f32.gmra.mrb[18].mxu0 %vm280_vm7, %v3170_v54 }
 0x30c   :  { %2451 = vmatprep.mubr.msk.f32.mxu0 %vm3013_vm0, %v3012_v6 }
 0x3ce   :  { %v597_v42 = vpop.f32.mrb[10].mxu0 }
 0x3cf   :  { %v599_v49 = vpop.f32.mrb[11].mxu0  ;;  %v598_v50 = vadd.f32 %v597_v42, %v3463_v41 }
 0x3d0   :  { %v600_v22 = vadd.f32 %v599_v49, %v3265_v27 }
 0x3d2   :  { %v603_v54 = vpop.f32.mrb[12].mxu0  ;;  %v626_v25 = vsel %vm280_vm7, %v600_v22, -inf }
 0x3d3   :  { %v605_v40 = vpop.f32.mrb[13].mxu0  ;;  %v627_v44 = vmax.f32 %v598_v50, %v626_v25  ;;  %v604_v28 = vadd.f32 %v603_v54, %v3470_v23 }
 0x3d4   :  { %v606_v46 = vadd.f32 %v605_v40, %v3283_v36 }
 0x3d5   :  { %628 = vmax.xlane.f32.xlu0 %v627_v44 }
 0x3d6   :  { %v609_v48 = vpop.f32.mrb[14].mxu0  ;;  %v630_v51 = vsel %vm280_vm7, %v606_v46, -inf }
 0x3d7   :  { %v611_v35 = vpop.f32.mrb[15].mxu0  ;;  %v631_v53 = vmax.f32 %v604_v28, %v630_v51  ;;  %v610_v57 = vadd.f32 %v609_v48, %v3478_v47 }
 0x3d8   :  { %v612_v55 = vadd.f32 %v611_v35, %v3299_v45 }
 0x3d9   :  { %632 = vmax.xlane.f32.xlu1 %v631_v53 }
 0x3da   :  { %v615_v59 = vpop.f32.mrb[16].mxu0  ;;  %v634_v60 = vsel %vm280_vm7, %v612_v55, -inf }
 0x3db   :  { %v617_v43 = vpop.f32.mrb[17].mxu0  ;;  %v635_v63 = vmax.f32 %v610_v57, %v634_v60  ;;  %v616_v1 = vadd.f32 %v615_v59, %v3486_v58 }
 0x3dc   :  { %v618_v0 = vadd.f32 %v617_v43, %v3315_v56 }
 0x3dd   :  { %636 = vmax.xlane.f32.xlu0 %v635_v63 }
 0x3de   :  { %v621_v3 = vpop.f32.mrb[18].mxu0  ;;  %v638_v5 = vsel %vm280_vm7, %v618_v0, -inf }
 0x3df   :  { %v623_v52 = vpop.f32.mrb[19].mxu0  ;;  %v639_v9 = vmax.f32 %v616_v1, %v638_v5  ;;  %v622_v14 = vadd.f32 %v621_v3, %v3494_v2  ;;  %v881_v3 = vld [vmem:[%s4011_s4] sm:$0xff]  ;;  %v882_v5 = vld [vmem:[%s4011_s4 + $0x8] sm:$0xff] }
 0x3e0   :  { %v624_v10 = vadd.f32 %v623_v52, %v3325_v62  ;;  %v2714_v52 = vpack.c.bf16 %v882_v5, %v881_v3 }
 0x3e1   :  { %640 = vmax.xlane.f32.xlu0 %v639_v9  ;;  %v883_v9 = vld [vmem:[%s4011_s4 + $0x10] sm:$0xff] }
 0x3e2   :  { %v642_v18 = vsel %vm280_vm7, %v624_v10, -inf  ;;  %2715 = vmatpush3.bf16.msra.mxu0 %v2714_v52  ;;  %v1008_v52 = vld [vmem:[%s4013_s6 + $0x30] sm:$0xff] }
 0x3e3   :  { %v643_v19 = vmax.f32 %v622_v14, %v642_v18  ;;  %2716 = vmatprep.subr.bf16.mxu0 %v3014_v11  ;;  %v1002_v18 = vld [vmem:[%s4013_s6] sm:$0xff] }
 0x3e5   :  { %644 = vmax.xlane.f32.xlu1 %v643_v19  ;;  %v1003_v19 = vld [vmem:[%s4013_s6 + $0x8] sm:$0xff] }
 0x462   :  { %v629_v20 = vpop.xlane.xlu0 %628 }
 0x463   :  { %v646_v21 = vsub.f32 %v598_v50, %v629_v20  ;;  %v647_v24 = vsub.f32 %v600_v22, %v629_v20  ;;  %v1004_v20 = vld [vmem:[%s4013_s6 + $0x10] sm:$0xff] }
 0x465   :  { %v656_v26 = vmul.f32 1.442695, %v646_v21  ;;  %v658_v61 = vmul.f32 1.442695, %v647_v24  ;;  %v2720_v21 = vpack.c.bf16 %v1003_v19, %v1002_v18  ;;  %v1005_v24 = vld [vmem:[%s4013_s6 + $0x18] sm:$0xff]  ;;  %v2210_v18 = vld [vmem:[%s4009_s2 + $0x28] sm:$0xff] }
 0x466   :  { %v633_v15 = vpop.xlane.xlu1 %632  ;;  %v2211_v19 = vld [vmem:[%s4009_s2 + $0x30] sm:$0xff] }
 0x467   :  { %2927 = vpow2.f32 %v656_v26  ;;  %v648_v31 = vsub.f32 %v604_v28, %v633_v15  ;;  %v649_v32 = vsub.f32 %v606_v46, %v633_v15  ;;  %v2723_v26 = vpack.c.bf16 %v1005_v24, %v1004_v20  ;;  %v1007_v15 = vld [vmem:[%s4013_s6 + $0x28] sm:$0xff] }
 0x468   :  { %2929 = vpow2.f32 %v658_v61  ;;  %v1006_v61 = vld [vmem:[%s4013_s6 + $0x20] sm:$0xff] }
 0x469   :  { %v660_v33 = vmul.f32 1.442695, %v648_v31  ;;  %v662_v34 = vmul.f32 1.442695, %v649_v32  ;;  %v2726_v31 = vpack.c.bf16 %v1007_v15, %v1006_v61 }
 0x46a   :  { %v637_v37 = vpop.xlane.xlu0 %636 }
 0x46b   :  { %2931 = vpow2.f32 %v660_v33  ;;  %v650_v17 = vsub.f32 %v610_v57, %v637_v37  ;;  %v651_v38 = vsub.f32 %v612_v55, %v637_v37  ;;  %v3021_v55 = vmov 1.0|1.0  }
 0x46c   :  { %2933 = vpow2.f32 %v662_v34 }
 0x46d   :  { %v664_v39 = vmul.f32 1.442695, %v650_v17  ;;  %v666_v42 = vmul.f32 1.442695, %v651_v38 }
 0x46e   :  { %v641_v49 = vpop.xlane.xlu0 %640 }
 0x46f   :  { %2935 = vpow2.f32 %v664_v39  ;;  %v652_v50 = vsub.f32 %v616_v1, %v641_v49  ;;  %v653_v22 = vsub.f32 %v618_v0, %v641_v49 }
 0x470   :  { %2937 = vpow2.f32 %v666_v42 }
 0x471   :  { %v2928_v54 = vpop.eup %2927  ;;  %v668_v25 = vmul.f32 1.442695, %v652_v50  ;;  %v670_v40 = vmul.f32 1.442695, %v653_v22 }
 0x472   :  { %v2930_v44 = vpop.eup %2929  ;;  %v645_v46 = vpop.xlane.xlu1 %644 }
 0x473   :  { %2939 = vpow2.f32 %v668_v25  ;;  %v654_v28 = vsub.f32 %v622_v14, %v645_v46  ;;  %v655_v48 = vsub.f32 %v624_v10, %v645_v46  ;;  %2167 = vmatprep.mubr.msk.f32.mxu1 %vm280_vm7, %v2930_v44  ;;  %v884_v10 = vld [vmem:[%s4011_s4 + $0x18] sm:$0xff] }
 0x474   :  { %2941 = vpow2.f32 %v670_v40  ;;  %756 = vmatmul.mubr.f32.vlgmr.msra.gmra.mrb[10].mxu1 %v2928_v54  ;;  %v2717_v14 = vpack.c.bf16 %v884_v10, %v883_v9  ;;  %v1009_v9 = vld [vmem:[%s4013_s6 + $0x38] sm:$0xff] }
 0x475   :  { %v2932_v51 = vpop.eup %2931  ;;  %v672_v35 = vmul.f32 1.442695, %v654_v28  ;;  %v674_v53 = vmul.f32 1.442695, %v655_v48  ;;  %2685 = vmatpush1.bf16.msk.msra.mxu1 %vm3337_vm8, %v3021_v55  ;;  %v2729_v10 = vpack.c.bf16 %v1009_v9, %v1008_v52 }
 0x476   :  { %v2934_v57 = vpop.eup %2933  ;;  %2686 = vmatprep.subr.bf16.mxu1 %v3014_v11  ;;  %2718 = vmatpush3.bf16.msra.mxu0 %v2717_v14  ;;  %v2209_v14 = vld [vmem:[%s4009_s2 + $0x20] sm:$0xff] }
 0x477   :  { %2943 = vpow2.f32 %v672_v35  ;;  %2168 = vmatprep.mubr.msk.f32.mxu1 %vm280_vm7, %v2934_v57  ;;  %2731 = vmatprep.subr.bf16.mxu0 %v3014_v11  ;;  %v2732_v20 = vpack.c.bf16 %v2210_v18, %v2209_v14 }
 0x478   :  { %2945 = vpow2.f32 %v674_v53  ;;  %761 = vmatmul.mubr.f32.gmra.mrb[12].mxu1 %v2932_v51 }
 0x479   :  { %v2936_v59 = vpop.eup %2935  ;;  %2688 = vmatpush1.bf16.msk.msra.mxu1 %vm3337_vm8, %v3021_v55 }
 0x47a   :  { %v2938_v60 = vpop.eup %2937  ;;  %2689 = vmatprep.subr.bf16.mxu1 %v3014_v11 }
 0x47b   :  { %2169 = vmatprep.mubr.msk.f32.mxu1 %vm280_vm7, %v2938_v60 }
 0x47c   :  { %766 = vmatmul.mubr.f32.gmra.mrb[14].mxu1 %v2936_v59 }
 0x47d   :  { %v2940_v43 = vpop.eup %2939  ;;  %2691 = vmatpush1.bf16.msk.msra.mxu1 %vm3360_vm9, %v3021_v55 }
 0x47e   :  { %v2942_v63 = vpop.eup %2941  ;;  %2692 = vmatprep.subr.bf16.mxu1 %v3014_v11 }
 0x47f   :  { %2170 = vmatprep.mubr.msk.f32.mxu1 %vm280_vm7, %v2942_v63 }
 0x480   :  { %771 = vmatmul.mubr.f32.gmra.mrb[16].mxu1 %v2940_v43 }
 0x481   :  { %v2944_v0 = vpop.eup %2943  ;;  %2694 = vmatpush1.bf16.msk.msra.mxu1 %vm3373_vm10, %v3021_v55 }
 0x482   :  { %v2946_v1 = vpop.eup %2945  ;;  %2695 = vmatprep.subr.bf16.mxu1 %v3014_v11 }
 0x483   :  { %2171 = vmatprep.mubr.msk.f32.mxu1 %vm280_vm7, %v2946_v1 }
 0x484   :  { %776 = vmatmul.mubr.f32.gmra.mrb[18].mxu1 %v2944_v0 }
 0x485   :  { %2697 = vmatpush1.bf16.msk.msra.mxu1 %vm3373_vm10, %v3021_v55  ;;  %2192 = vmatprep.mubr.msk.f32.mxu1 %vm280_vm7, %v2930_v44 }
 0x486   :  { %2698 = vmatprep.subr.bf16.mxu1 %v3014_v11 }
 0x489   :  { %2700 = vmatpush1.bf16.msk.msra.mxu1 %vm3395_vm11, %v3021_v55 }
 0x48a   :  { %2701 = vmatprep.subr.bf16.mxu1 %v3014_v11 }
 0x48d   :  { %2703 = vmatpush1.bf16.msk.msra.mxu1 %vm3395_vm11, %v3021_v55 }
 0x48e   :  { %2704 = vmatprep.subr.bf16.mxu1 %v3014_v11 }
 0x491   :  { %2706 = vmatpush1.bf16.msk.msra.mxu1 %vm3418_vm12, %v3021_v55 }
 0x492   :  { %2707 = vmatprep.subr.bf16.mxu1 %v3014_v11 }
 0x495   :  { %2709 = vmatpush1.bf16.msk.msra.mxu1 %vm3428_vm13, %v3021_v55 }
 0x496   :  { %2710 = vmatprep.subr.bf16.mxu1 %v3014_v11 }
 0x499   :  { %2712 = vmatpush1.bf16.msk.msra.mxu1 %vm3428_vm13, %v3021_v55 }
 0x49a   :  { %2719 = vmatprep.subr.bf16.mxu1 %v3014_v11 }
 0x49c   :  { %846 = vmatmul.mubr.f32.vlgmr.msra.gmra.mrb[20].mxu1 %v2928_v54 }
 0x49d   :  { %2193 = vmatprep.mubr.msk.f32.mxu1 %vm280_vm7, %v2934_v57  ;;  %2721 = vmatpush3.bf16.msra.mxu1 %v2720_v21  ;;  %v2212_v21 = vld [vmem:[%s4009_s2 + $0x38] sm:$0xff] }
 0x49e   :  { %2722 = vmatprep.subr.bf16.mxu1 %v3014_v11  ;;  %v2735_v24 = vpack.c.bf16 %v2212_v21, %v2211_v19  ;;  %v2214_v19 = vld [vmem:[%s4010_s3 + $0x1] ss:$0 sm:$0xff] }
 0x4a0   :  { %851 = vmatmul.mubr.f32.gmra.mrb[22].mxu1 %v2932_v51 }
 0x4a1   :  { %2194 = vmatprep.mubr.msk.f32.mxu1 %vm280_vm7, %v2938_v60  ;;  %2724 = vmatpush3.bf16.msra.mxu1 %v2723_v26  ;;  %v2197_v26 = vld [vmem:[%s4012_s5] ss:$0 sm:$0xff] }
 0x4a2   :  { %2725 = vmatprep.subr.bf16.mxu1 %v3014_v11 }
 0x4a4   :  { %856 = vmatmul.mubr.f32.gmra.mrb[24].mxu1 %v2936_v59 }
 0x4a5   :  { %2195 = vmatprep.mubr.msk.f32.mxu1 %vm280_vm7, %v2942_v63  ;;  %2727 = vmatpush3.bf16.msra.mxu1 %v2726_v31 }
 0x4a6   :  { %2728 = vmatprep.subr.bf16.mxu1 %v3014_v11 }
 0x4a8   :  { %861 = vmatmul.mubr.f32.gmra.mrb[26].mxu1 %v2940_v43 }
 0x4a9   :  { %2196 = vmatprep.mubr.msk.f32.mxu1 %vm280_vm7, %v2946_v1  ;;  %2730 = vmatpush3.bf16.msra.mxu1 %v2729_v10 }
 0x4aa   :  { %2737 = vmatprep.subr.bf16.mxu1 %v3014_v11 }
 0x4ac   :  { %866 = vmatmul.mubr.f32.gmra.mrb[28].mxu1 %v2944_v0 }
 0x4ad   :  { %2482 = vmatprep.mubr.msk.f32.mxu1 %vm3013_vm0, %v3012_v6 }
 0x547   :  { %v757_v32 = vpop.f32.mrb[10].mxu1 }
 0x548   :  { %v759_v33 = vpop.f32.mrb[11].mxu1 }
 0x54b   :  { %v762_v34 = vpop.f32.mrb[12].mxu1 }
 0x54c   :  { %v764_v37 = vpop.f32.mrb[13].mxu1 }
 0x54f   :  { %v767_v17 = vpop.f32.mrb[14].mxu1 }
 0x550   :  { %v769_v38 = vpop.f32.mrb[15].mxu1 }
 0x553   :  { %v772_v39 = vpop.f32.mrb[16].mxu1 }
 0x554   :  { %v774_v42 = vpop.f32.mrb[17].mxu1 }
 0x557   :  { %v777_v49 = vpop.f32.mrb[18].mxu1 }
 0x558   :  { %v779_v50 = vpop.f32.mrb[19].mxu1 }
 0x56f   :  { %v847_v22 = vpop.f32.mrb[20].mxu1 }
 0x570   :  { %2947 = vrcp.f32 %v847_v22  ;;  %v849_v54 = vpop.f32.mrb[21].mxu1 }
 0x573   :  { %v852_v25 = vpop.f32.mrb[22].mxu1 }
 0x574   :  { %2949 = vrcp.f32 %v852_v25  ;;  %v854_v40 = vpop.f32.mrb[23].mxu1 }
 0x577   :  { %v857_v44 = vpop.f32.mrb[24].mxu1 }
 0x578   :  { %2951 = vrcp.f32 %v857_v44  ;;  %v859_v46 = vpop.f32.mrb[25].mxu1 }
 0x57a   :  { %v2948_v28 = vpop.eup %2947 }
 0x57b   :  { %v876_v48 = vmul.f32 %v2948_v28, %v757_v32  ;;  %v862_v51 = vpop.f32.mrb[26].mxu1 }
 0x57c   :  { %2953 = vrcp.f32 %v862_v51  ;;  %v864_v35 = vpop.f32.mrb[27].mxu1 }
 0x57d   :  { %2452 = vmatmul.mubr.msk.f32.vlgmr.msra.gmra.mrb[20].mxu0 %vm280_vm7, %v876_v48  ;;  %v2203_v48 = vld [vmem:[%s4014_s7] ss:$0 sm:$0xff] }
 0x57e   :  { %v2950_v53 = vpop.eup %2949  ;;  %2454 = vmatprep.mubr.msk.f32.mxu0 %vm3013_vm0, %v3012_v6  ;;  %2733 = vmatpush3.bf16.msra.mxu0 %v2732_v20 }
 0x57f   :  { %v867_v57 = vpop.f32.mrb[28].mxu1  ;;  %v877_v59 = vmul.f32 %v2950_v53, %v762_v34  ;;  %2734 = vmatprep.subr.bf16.mxu0 %v3014_v11 }
 0x580   :  { %2955 = vrcp.f32 %v867_v57  ;;  %v869_v60 = vpop.f32.mrb[29].mxu1 }
 0x581   :  { %2455 = vmatmul.mubr.msk.f32.gmra.mrb[22].mxu0 %vm280_vm7, %v877_v59 }
 0x582   :  { %v2952_v43 = vpop.eup %2951  ;;  %2457 = vmatprep.mubr.msk.f32.mxu0 %vm3013_vm0, %v3012_v6  ;;  %2736 = vmatpush3.bf16.msra.mxu0 %v2735_v24 }
 0x583   :  { %v878_v63 = vmul.f32 %v2952_v43, %v767_v17  ;;  %2777 = vmatprep.subr.bf16.mxu0 %v3014_v11 }
 0x585   :  { %2458 = vmatmul.mubr.msk.f32.gmra.mrb[24].mxu0 %vm280_vm7, %v878_v63 }
 0x586   :  { %v2954_v0 = vpop.eup %2953  ;;  %2460 = vmatprep.mubr.msk.f32.mxu0 %vm3013_vm0, %v3012_v6 }
 0x587   :  { %v879_v1 = vmul.f32 %v2954_v0, %v772_v39 }
 0x589   :  { %2461 = vmatmul.mubr.msk.f32.gmra.mrb[26].mxu0 %vm280_vm7, %v879_v1 }
 0x58a   :  { %v2956_v3 = vpop.eup %2955  ;;  %2463 = vmatprep.mubr.msk.f32.mxu0 %vm3013_vm0, %v3012_v6 }
 0x58b   :  { %v880_v5 = vmul.f32 %v2956_v3, %v777_v49 }
 0x58d   :  { %2464 = vmatmul.mubr.msk.f32.gmra.mrb[28].mxu0 %vm280_vm7, %v880_v5 }
 0x58e   :  { %2505 = vmatprep.mubr.msk.f32.mxu0 %vm3013_vm0, %v3012_v6 }
 0x650   :  { %v973_v61 = vpop.f32.mrb[20].mxu0 }
 0x651   :  { %v974_v15 = vadd.f32 %v2197_v26, %v973_v61  ;;  %v2453_v31 = vpop.f32.mrb[21].mxu0 }
 0x653   :  { %v997_v32 = vmax.f32 %v974_v15, 0.0 }
 0x654   :  { %v978_v33 = vpop.f32.mrb[22].mxu0 }
 0x655   :  { %v979_v34 = vadd.f32 %v2197_v26, %v978_v33  ;;  %v2456_v37 = vpop.f32.mrb[23].mxu0  ;;  %2483 = vmatmul.mubr.msk.f32.vlgmr.msra.gmra.mrb[30].mxu1 %vm1017_vm3, %v997_v32 }
 0x656   :  { %2485 = vmatprep.mubr.msk.f32.mxu1 %vm3013_vm0, %v3012_v6 }
 0x657   :  { %v998_v17 = vmax.f32 %v979_v34, 0.0 }
 0x658   :  { %v983_v38 = vpop.f32.mrb[24].mxu0 }
 0x659   :  { %v984_v39 = vadd.f32 %v2197_v26, %v983_v38  ;;  %v2459_v42 = vpop.f32.mrb[25].mxu0  ;;  %2486 = vmatmul.mubr.msk.f32.gmra.mrb[32].mxu1 %vm1017_vm3, %v998_v17 }
 0x65a   :  { %2488 = vmatprep.mubr.msk.f32.mxu1 %vm3013_vm0, %v3012_v6 }
 0x65b   :  { %v999_v49 = vmax.f32 %v984_v39, 0.0 }
 0x65c   :  { %v988_v50 = vpop.f32.mrb[26].mxu0 }
 0x65d   :  { %v989_v22 = vadd.f32 %v2197_v26, %v988_v50  ;;  %v2462_v54 = vpop.f32.mrb[27].mxu0  ;;  %2489 = vmatmul.mubr.msk.f32.gmra.mrb[34].mxu1 %vm1017_vm3, %v999_v49 }
 0x65e   :  { %2491 = vmatprep.mubr.msk.f32.mxu1 %vm3013_vm0, %v3012_v6 }
 0x65f   :  { %v1000_v25 = vmax.f32 %v989_v22, 0.0 }
 0x660   :  { %v993_v40 = vpop.f32.mrb[28].mxu0 }
 0x661   :  { %v994_v44 = vadd.f32 %v2197_v26, %v993_v40  ;;  %v2465_v46 = vpop.f32.mrb[29].mxu0  ;;  %2492 = vmatmul.mubr.msk.f32.gmra.mrb[36].mxu1 %vm1017_vm3, %v1000_v25 }
 0x662   :  { %2494 = vmatprep.mubr.msk.f32.mxu1 %vm3013_vm0, %v3012_v6 }
 0x663   :  { %v1001_v28 = vmax.f32 %v994_v44, 0.0 }
 0x665   :  { %2495 = vmatmul.mubr.msk.f32.gmra.mrb[38].mxu1 %vm1017_vm3, %v1001_v28 }
 0x666   :  { %1450 = vmatprep.mubr.f32.mxu1 %v3012_v6 }
 0x728   :  { %v1099_v51 = vpop.f32.mrb[30].mxu1 }
 0x729   :  { %v1100_v35 = vadd.f32 %v2203_v48, %v1099_v51  ;;  %v2484_v53 = vpop.f32.mrb[31].mxu1 }
 0x72b   :  { %2506 = vmatmul.mubr.msk.f32.vlgmr.msra.gmra.mrb[30].mxu0 %vm280_vm7, %v1100_v35 }
 0x72c   :  { %v1104_v57 = vpop.f32.mrb[32].mxu1  ;;  %2508 = vmatprep.mubr.msk.f32.mxu0 %vm3013_vm0, %v3012_v6 }
 0x72d   :  { %v1105_v59 = vadd.f32 %v2203_v48, %v1104_v57  ;;  %v2487_v60 = vpop.f32.mrb[33].mxu1 }
 0x72f   :  { %2509 = vmatmul.mubr.msk.f32.gmra.mrb[32].mxu0 %vm280_vm7, %v1105_v59 }
 0x730   :  { %v1109_v43 = vpop.f32.mrb[34].mxu1  ;;  %2511 = vmatprep.mubr.msk.f32.mxu0 %vm3013_vm0, %v3012_v6 }
 0x731   :  { %v1110_v63 = vadd.f32 %v2203_v48, %v1109_v43  ;;  %v2490_v0 = vpop.f32.mrb[35].mxu1 }
 0x733   :  { %2512 = vmatmul.mubr.msk.f32.gmra.mrb[34].mxu0 %vm280_vm7, %v1110_v63 }
 0x734   :  { %v1114_v1 = vpop.f32.mrb[36].mxu1  ;;  %2514 = vmatprep.mubr.msk.f32.mxu0 %vm3013_vm0, %v3012_v6 }
 0x735   :  { %v1115_v3 = vadd.f32 %v2203_v48, %v1114_v1  ;;  %v2493_v5 = vpop.f32.mrb[37].mxu1 }
 0x737   :  { %2515 = vmatmul.mubr.msk.f32.gmra.mrb[36].mxu0 %vm280_vm7, %v1115_v3 }
 0x738   :  { %v1119_v52 = vpop.f32.mrb[38].mxu1  ;;  %2517 = vmatprep.mubr.msk.f32.mxu0 %vm3013_vm0, %v3012_v6 }
 0x739   :  { %v1120_v9 = vadd.f32 %v2203_v48, %v1119_v52  ;;  %v2496_v10 = vpop.f32.mrb[39].mxu1 }
 0x73b   :  { %2518 = vmatmul.mubr.msk.f32.gmra.mrb[38].mxu0 %vm280_vm7, %v1120_v9 }
 0x7fe   :  { %v1217_v14 = vpop.f32.mrb[30].mxu0 }
 0x7ff   :  { %v2507_v18 = vpop.f32.mrb[31].mxu0  ;;  %v3659_v21 = vadd.f32 %v2214_v19, %v1217_v14 }
 0x802   :  { %v1222_v20 = vpop.f32.mrb[32].mxu0 }
 0x803   :  { %v3661_v24 = vadd.f32 %v2214_v19, %v1222_v20  ;;  %v2510_v26 = vpop.f32.mrb[33].mxu0 }
 0x805   :  { %v2907_v61 = vpack.i.bf16 %v3661_v24, %v3659_v21 }
 0x806   :  { %v1227_v15 = vpop.f32.mrb[34].mxu0 }
 0x807   :  { %2908 = vrot.lane.b32.xlu0 %v2907_v61, %s3015_s29  ;;  %v2513_v31 = vpop.f32.mrb[35].mxu0  ;;  %v3666_v33 = vadd.f32 %v2214_v19, %v1227_v15 }
 0x80a   :  { %v1232_v32 = vpop.f32.mrb[36].mxu0 }
 0x80b   :  { %v3668_v34 = vadd.f32 %v2214_v19, %v1232_v32  ;;  %2918 = vrot.lane.b32.xlu0 %v2907_v61, %s3019_s12  ;;  %v2516_v37 = vpop.f32.mrb[37].mxu0 }
 0x80d   :  { %v2912_v17 = vpack.i.bf16 %v3668_v34, %v3666_v33 }
 0x80e   :  { %v1237_v38 = vpop.f32.mrb[38].mxu0 }
 0x80f   :  { %v3673_v39 = vadd.f32 %v2214_v19, %v1237_v38  ;;  %2913 = vrot.lane.b32.xlu1 %v2912_v17, %s3015_s29  ;;  %v2519_v42 = vpop.f32.mrb[39].mxu0 }
 0x811   :  { %1289 = vrot.lane.b32.xlu0 %v3673_v39, %s3019_s12 }
 0x813   :  { %1254 = vrot.lane.b32.xlu1 %v3673_v39, %s3015_s29 }
 0x817   :  { %2923 = vrot.lane.b32.xlu1 %v2912_v17, %s3019_s12 }
 0x879   :  { %v2909_v49 = vpop.permute.xlu0 %2908 }
 0x87a   :  { %v3681_v50 = vunpack.i.h.bf16 %v2909_v49  ;;  %v3683_v22 = vunpack.i.l.bf16 %v2909_v49 }
 0x87c   :  { %v1262_v54 = vsel %vm261_vm15, %v3681_v50, 0.0  ;;  %v1261_v25 = vsel %vm261_vm15, %v3683_v22, 0.0  ;;  %v1266_v9 = vsel %vm262_vm5, %v3683_v22, 0.0  ;;  %v1267_v20 = vsel %vm262_vm5, %v3681_v50, 0.0 }
 0x87d   :  { %v2919_v40 = vpop.permute.xlu0 %2918  ;;  %v2738_v44 = vpack.c.bf16 %v1262_v54, %v1261_v25  ;;  %v1272_v37 = vsel %vm263_vm6, %v3681_v50, 0.0  ;;  %v1271_v17 = vsel %vm263_vm6, %v3683_v22, 0.0 }
 0x87e   :  { %v2921_v46 = vunpack.i.h.bf16 %v2919_v40  ;;  %v2920_v28 = vunpack.i.l.bf16 %v2919_v40  ;;  %v2758_v38 = vpack.c.bf16 %v1272_v37, %v1271_v17  ;;  %v1276_v40 = vsel %vm264_vm2, %v3683_v22, 0.0 }
 0x87f   :  { %2740 = vmatpush1.bf16.xpose.msk.msra.mxu1 %vm3229_vm1, %v2738_v44 }
 0x880   :  { %v2778_v48 = vpack.c.bf16 %v2921_v46, %v2920_v28  ;;  %2741 = vmatprep.subr.bf16.mxu1 %v3014_v11 }
 0x881   :  { %v2914_v51 = vpop.permute.xlu1 %2913 }
 0x882   :  { %v3694_v35 = vunpack.i.h.bf16 %v2914_v51  ;;  %v3696_v53 = vunpack.i.l.bf16 %v2914_v51  ;;  %2780 = vmatpush1.bf16.msk.msra.mxu0 %vm3337_vm8, %v2778_v48 }
 0x883   :  { %2781 = vmatprep.subr.bf16.mxu0 %v3014_v11  ;;  %v1290_v52 = vpop.permute.xlu0 %1289 }
 0x884   :  { %v1264_v57 = vsel %vm261_vm15, %v3694_v35, 0.0  ;;  %v1263_v59 = vsel %vm261_vm15, %v3696_v53, 0.0  ;;  %v2786_v14 = vpack.c.bf16 %v2920_v28, %v1290_v52  ;;  %v1268_v18 = vsel %vm262_vm5, %v3696_v53, 0.0 }
 0x885   :  { %v2742_v60 = vpack.c.bf16 %v1264_v57, %v1263_v59  ;;  %v3707_v43 = vpop.permute.xlu1 %1254  ;;  %v2750_v26 = vpack.c.bf16 %v1268_v18, %v1267_v20  ;;  %v1269_v31 = vsel %vm262_vm5, %v3694_v35, 0.0  ;;  %v1274_v42 = vsel %vm263_vm6, %v3694_v35, 0.0 }
 0x886   :  { %v1265_v3 = vsel %vm261_vm15, %v3707_v43, 0.0  ;;  %v1270_v15 = vsel %vm262_vm5, %v3707_v43, 0.0  ;;  %v1273_v49 = vsel %vm263_vm6, %v3696_v53, 0.0  ;;  %v1275_v25 = vsel %vm263_vm6, %v3707_v43, 0.0 }
 0x887   :  { %2744 = vmatpush1.bf16.xpose.msk.msra.mxu1 %vm3229_vm1, %v2742_v60  ;;  %v2746_v10 = vpack.c.bf16 %v1266_v9, %v1265_v3  ;;  %v2754_v32 = vpack.c.bf16 %v1270_v15, %v1269_v31  ;;  %v2762_v54 = vpack.c.bf16 %v1274_v42, %v1273_v49  ;;  %v2766_v44 = vpack.c.bf16 %v1276_v40, %v1275_v25 }
 0x888   :  { %2745 = vmatprep.subr.bf16.mxu1 %v3014_v11  ;;  %v1277_v28 = vsel %vm264_vm2, %v3681_v50, 0.0  ;;  %v1280_v22 = vsel %vm264_vm2, %v3707_v43, 0.0  ;;  %v1279_v51 = vsel %vm264_vm2, %v3694_v35, 0.0 }
 0x889   :  { %v2924_v63 = vpop.permute.xlu1 %2923  ;;  %v2774_v57 = vpack.c.bf16 %v1280_v22, %v1279_v51 }
 0x88a   :  { %v2926_v0 = vunpack.i.h.bf16 %v2924_v63  ;;  %v2925_v1 = vunpack.i.l.bf16 %v2924_v63 }
 0x88c   :  { %v2782_v5 = vpack.c.bf16 %v2926_v0, %v2925_v1  ;;  %v2790_v19 = vpack.c.bf16 %v2925_v1, %v2921_v46  ;;  %v2794_v61 = vpack.c.bf16 %v1290_v52, %v2926_v0  ;;  %v1278_v46 = vsel %vm264_vm2, %v3696_v53, 0.0 }
 0x88e   :  { %2784 = vmatpush1.bf16.msk.msra.mxu0 %vm3337_vm8, %v2782_v5 }
 0x88f   :  { %2785 = vmatprep.subr.bf16.mxu0 %v3014_v11  ;;  %2748 = vmatpush1.bf16.xpose.msk.msra.mxu1 %vm3229_vm1, %v2746_v10 }
 0x890   :  { %2749 = vmatprep.subr.bf16.mxu1 %v3014_v11 }
 0x892   :  { %2788 = vmatpush1.bf16.msk.msra.mxu0 %vm3360_vm9, %v2786_v14 }
 0x893   :  { %2789 = vmatprep.subr.bf16.mxu0 %v3014_v11 }
 0x896   :  { %2792 = vmatpush1.bf16.msk.msra.mxu0 %vm3373_vm10, %v2790_v19 }
 0x897   :  { %2793 = vmatprep.subr.bf16.mxu0 %v3014_v11  ;;  %2752 = vmatpush1.bf16.xpose.msk.msra.mxu1 %vm3229_vm1, %v2750_v26 }
 0x898   :  { %2753 = vmatprep.subr.bf16.mxu1 %v3014_v11 }
 0x89a   :  { %2796 = vmatpush1.bf16.msk.msra.mxu0 %vm3373_vm10, %v2794_v61 }
 0x89b   :  { %2797 = vmatprep.subr.bf16.mxu0 %v3014_v11 }
 0x89e   :  { %2800 = vmatpush1.bf16.msk.msra.mxu0 %vm3395_vm11, %v2778_v48  ;;  %v2770_v48 = vpack.c.bf16 %v1278_v46, %v1277_v28 }
 0x89f   :  { %2801 = vmatprep.subr.bf16.mxu0 %v3014_v11  ;;  %2756 = vmatpush1.bf16.xpose.msk.msra.mxu1 %vm3229_vm1, %v2754_v32 }
 0x8a0   :  { %2757 = vmatprep.subr.bf16.mxu1 %v3014_v11 }
 0x8a2   :  { %2804 = vmatpush1.bf16.msk.msra.mxu0 %vm3395_vm11, %v2782_v5 }
 0x8a3   :  { %2805 = vmatprep.subr.bf16.mxu0 %v3014_v11 }
 0x8a6   :  { %2808 = vmatpush1.bf16.msk.msra.mxu0 %vm3418_vm12, %v2786_v14 }
 0x8a7   :  { %2809 = vmatprep.subr.bf16.mxu0 %v3014_v11  ;;  %2760 = vmatpush1.bf16.xpose.msk.msra.mxu1 %vm3229_vm1, %v2758_v38 }
 0x8a8   :  { %2761 = vmatprep.subr.bf16.mxu1 %v3014_v11 }
 0x8aa   :  { %2812 = vmatpush1.bf16.msk.msra.mxu0 %vm3428_vm13, %v2790_v19 }
 0x8ab   :  { %2813 = vmatprep.subr.bf16.mxu0 %v3014_v11 }
 0x8ae   :  { %2816 = vmatpush1.bf16.msk.msra.mxu0 %vm3428_vm13, %v2794_v61 }
 0x8af   :  { %2817 = vmatprep.subr.bf16.mxu0 %v3014_v11  ;;  %2764 = vmatpush1.bf16.xpose.msk.msra.mxu1 %vm3229_vm1, %v2762_v54 }
 0x8b0   :  { %2765 = vmatprep.subr.bf16.mxu1 %v3014_v11 }
 0x8b7   :  { %2768 = vmatpush1.bf16.xpose.msk.msra.mxu1 %vm3229_vm1, %v2766_v44 }
 0x8b8   :  { %2769 = vmatprep.subr.bf16.mxu1 %v3014_v11 }
 0x8bf   :  { %2772 = vmatpush1.bf16.xpose.msk.msra.mxu1 %vm3229_vm1, %v2770_v48 }
 0x8c0   :  { %2773 = vmatprep.subr.bf16.mxu1 %v3014_v11 }
 0x8c7   :  { %2776 = vmatpush1.bf16.xpose.msk.msra.mxu1 %vm3229_vm1, %v2774_v57 }
 0x8c8   :  { %2847 = vmatprep.subr.bf16.mxu1 %v3014_v11 }
 0x8ce   :  { %2240 = vmatmul.mubr.msk.f32.vlgmr.msra.gmra.mrb[40].mxu1 %vm280_vm7, %v3659_v21 }
 0x8cf   :  { %1456 = vmatprep.mubr.f32.mxu1 %v3012_v6  ;;  %2849 = vmatpush3.bf16.msra.mxu1 %v2848_v8 }
 0x8d0   :  { %2850 = vmatprep.subr.bf16.mxu1 %v3014_v11 }
 0x8d2   :  { %2241 = vmatmul.mubr.msk.f32.gmra.mrb[42].mxu1 %vm280_vm7, %v3661_v24 }
 0x8d3   :  { %1462 = vmatprep.mubr.f32.mxu1 %v3012_v6 }
 0x8d6   :  { %2242 = vmatmul.mubr.msk.f32.gmra.mrb[44].mxu1 %vm280_vm7, %v3666_v33 }
 0x8d7   :  { %1468 = vmatprep.mubr.f32.mxu1 %v3012_v6 }
 0x8da   :  { %2243 = vmatmul.mubr.msk.f32.gmra.mrb[46].mxu1 %vm280_vm7, %v3668_v34 }
 0x8db   :  { %1474 = vmatprep.mubr.f32.mxu1 %v3012_v6 }
 0x8de   :  { %2244 = vmatmul.mubr.msk.f32.gmra.mrb[48].mxu1 %vm280_vm7, %v3673_v39 }
 0x8df   :  { %2528 = vmatprep.mubr.msk.f32.mxu1 %vm3013_vm0, %v3012_v6 }
 0x9a1   :  { %v1452_v4 = vpop.f32.mrb[40].mxu1 }
 0x9a2   :  { %v1454_v12 = vpop.f32.mrb[41].mxu1  ;;  %v1453_v24 = vadd.f32 %v1452_v4, %v3463_v41 }
 0x9a3   :  { %v1455_v21 = vadd.f32 %v1454_v12, %v3265_v27 }
 0x9a5   :  { %v1458_v33 = vpop.f32.mrb[42].mxu1  ;;  %v1481_v50 = vsel %vm280_vm7, %v1455_v21, -inf }
 0x9a6   :  { %v1460_v35 = vpop.f32.mrb[43].mxu1  ;;  %v1482_v53 = vmax.f32 %v1453_v24, %v1481_v50  ;;  %v1459_v59 = vadd.f32 %v1458_v33, %v3470_v23 }
 0x9a7   :  { %v1461_v34 = vadd.f32 %v1460_v35, %v3283_v36 }
 0x9a8   :  { %1483 = vmax.xlane.f32.xlu1 %v1482_v53 }
 0x9a9   :  { %v1464_v39 = vpop.f32.mrb[44].mxu1  ;;  %v1485_v60 = vsel %vm280_vm7, %v1461_v34, -inf }
 0x9aa   :  { %v1466_v43 = vpop.f32.mrb[45].mxu1  ;;  %v1486_v63 = vmax.f32 %v1459_v59, %v1485_v60  ;;  %v1465_v27 = vadd.f32 %v1464_v39, %v3478_v47  ;;  %v2307_v39 = vld [vmem:[%s4013_s6 + $0x48] sm:$0xff]  ;;  %v2308_v60 = vld [vmem:[%s4013_s6 + $0x50] sm:$0xff] }
 0x9ab   :  { %v1467_v0 = vadd.f32 %v1466_v43, %v3299_v45 }
 0x9ac   :  { %1487 = vmax.xlane.f32.xlu0 %v1486_v63  ;;  %v2309_v63 = vld [vmem:[%s4013_s6 + $0x58] sm:$0xff] }
 0x9ad   :  { %v1470_v41 = vpop.f32.mrb[46].mxu1  ;;  %v1489_v1 = vsel %vm280_vm7, %v1467_v0, -inf }
 0x9ae   :  { %v1472_v3 = vpop.f32.mrb[47].mxu1  ;;  %v1490_v5 = vmax.f32 %v1465_v27, %v1489_v1  ;;  %v1471_v23 = vadd.f32 %v1470_v41, %v3486_v58  ;;  %v2311_v41 = vld [vmem:[%s4013_s6 + $0x68] sm:$0xff] }
 0x9af   :  { %v1473_v36 = vadd.f32 %v1472_v3, %v3315_v56 }
 0x9b0   :  { %1491 = vmax.xlane.f32.xlu0 %v1490_v5 }
 0x9b1   :  { %v1476_v52 = vpop.f32.mrb[48].mxu1  ;;  %v1493_v9 = vsel %vm280_vm7, %v1473_v36, -inf }
 0x9b2   :  { %v1478_v10 = vpop.f32.mrb[49].mxu1  ;;  %v1494_v14 = vmax.f32 %v1471_v23, %v1493_v9  ;;  %v1477_v47 = vadd.f32 %v1476_v52, %v3494_v2 }
 0x9b3   :  { %v1479_v45 = vadd.f32 %v1478_v10, %v3325_v62 }
 0x9b4   :  { %1495 = vmax.xlane.f32.xlu1 %v1494_v14 }
 0x9b5   :  { %v1497_v18 = vsel %vm280_vm7, %v1479_v45, -inf }
 0x9b6   :  { %v1498_v19 = vmax.f32 %v1477_v47, %v1497_v18 }
 0x9b8   :  { %1499 = vmax.xlane.f32.xlu0 %v1498_v19 }
 0xa35   :  { %v1484_v20 = vpop.xlane.xlu1 %1483 }
 0xa36   :  { %v1501_v26 = vsub.f32 %v1453_v24, %v1484_v20  ;;  %v1502_v56 = vsub.f32 %v1455_v21, %v1484_v20 }
 0xa38   :  { %v1511_v61 = vmul.f32 1.442695, %v1501_v26  ;;  %v1513_v58 = vmul.f32 1.442695, %v1502_v56 }
 0xa39   :  { %v1488_v15 = vpop.xlane.xlu0 %1487 }
 0xa3a   :  { %2957 = vpow2.f32 %v1511_v61  ;;  %v1503_v31 = vsub.f32 %v1459_v59, %v1488_v15  ;;  %v1504_v32 = vsub.f32 %v1461_v34, %v1488_v15  ;;  %v2306_v59 = vld [vmem:[%s4013_s6 + $0x40] sm:$0xff] }
 0xa3b   :  { %2959 = vpow2.f32 %v1513_v58  ;;  %v2854_v43 = vpack.c.bf16 %v2307_v39, %v2306_v59 }
 0xa3c   :  { %v1515_v37 = vmul.f32 1.442695, %v1503_v31  ;;  %v1517_v17 = vmul.f32 1.442695, %v1504_v32 }
 0xa3d   :  { %v1492_v62 = vpop.xlane.xlu0 %1491 }
 0xa3e   :  { %2961 = vpow2.f32 %v1515_v37  ;;  %v1505_v2 = vsub.f32 %v1465_v27, %v1492_v62  ;;  %v1506_v38 = vsub.f32 %v1467_v0, %v1492_v62  ;;  %v2857_v0 = vpack.c.bf16 %v2309_v63, %v2308_v60  ;;  %v2310_v27 = vld [vmem:[%s4013_s6 + $0x60] sm:$0xff] }
 0xa3f   :  { %2963 = vpow2.f32 %v1517_v17  ;;  %v2860_v1 = vpack.c.bf16 %v2311_v41, %v2310_v27  ;;  %v2315_v27 = vld [vmem:[%s4014_s7 + $0x1] ss:$0 sm:$0xff]  ;;  %s3022_s7 = smov [#allocation2]  }
 0xa40   :  { %v1519_v42 = vmul.f32 1.442695, %v1505_v2  ;;  %v1521_v49 = vmul.f32 1.442695, %v1506_v38  ;;  %s2100_s11 = sshll.u32 %s3022_s7, 4  ;;  %s2101_s11 = int_to_ptr.vmem [resolvable:$true] %s2100_s11 }
 0xa41   :  { %v1496_v54 = vpop.xlane.xlu1 %1495  ;;  %s2987_s13 = scalar_lea.vmem %s2101_s11, 640  ;;  %p2992_p1 = scmp.lt.s32.totalorder %s2101_s11, %s2101_s11 }
 0xa42   :  { %2965 = vpow2.f32 %v1519_v42  ;;  %v1507_v25 = vsub.f32 %v1471_v23, %v1496_v54  ;;  %v1508_v40 = vsub.f32 %v1473_v36, %v1496_v54  ;;  %p2988_p0 = scmp.ne.s32.totalorder %s2101_s11, %s2987_s13  ;;  %p2993_p2 = scmp.lt.s32.totalorder %s2987_s13, %s2987_s13 }
 0xa43   :  { %2967 = vpow2.f32 %v1521_v49 }
 0xa44   :  { %v2958_v44 = vpop.eup %2957  ;;  %v1523_v46 = vmul.f32 1.442695, %v1507_v25  ;;  %v1525_v28 = vmul.f32 1.442695, %v1508_v40  ;;  %p2994_p3 = por %p2993_p2, %p2992_p1 }
 0xa45   :  { %v2960_v48 = vpop.eup %2959  ;;  %v1500_v22 = vpop.xlane.xlu0 %1499 }
 0xa46   :  { %2969 = vpow2.f32 %v1523_v46  ;;  %v1509_v51 = vsub.f32 %v1477_v47, %v1500_v22  ;;  %v1510_v57 = vsub.f32 %v1479_v45, %v1500_v22  ;;  %2265 = vmatprep.mubr.msk.f32.mxu0 %vm280_vm7, %v2960_v48  ;;  %v2313_v46 = vld [vmem:[%s4013_s6 + $0x78] sm:$0xff]  ;;  %v1982_v22 = vld [vmem:[%s4015_s8 + $0x8] sm:$0xff]  ;;  %p2995_p4 = pnand %p2994_p3, %p2988_p0 }
 0xa47   :  { %2971 = vpow2.f32 %v1525_v28  ;;  %1611 = vmatmul.mubr.f32.vlgmr.msra.gmra.mrb[40].mxu0 %v2958_v44 }
 0xa48   :  { %v2962_v4 = vpop.eup %2961  ;;  %v1527_v12 = vmul.f32 1.442695, %v1509_v51  ;;  %v1529_v21 = vmul.f32 1.442695, %v1510_v57  ;;  %2819 = vmatpush1.bf16.msk.msra.mxu0 %vm3337_vm8, %v3021_v55  ;;  %v1983_v51 = vld [vmem:[%s4015_s8 + $0x10] sm:$0xff] }
 0xa49   :  { %v2964_v24 = vpop.eup %2963  ;;  %2820 = vmatprep.subr.bf16.mxu0 %v3014_v11 }
 0xa4a   :  { %2973 = vpow2.f32 %v1527_v12  ;;  %2266 = vmatprep.mubr.msk.f32.mxu0 %vm280_vm7, %v2964_v24 }
 0xa4b   :  { %2975 = vpow2.f32 %v1529_v21  ;;  %1616 = vmatmul.mubr.f32.gmra.mrb[42].mxu0 %v2962_v4  ;;  %v2300_v21 = vld [vmem:[%s4012_s5 + $0x1] ss:$0 sm:$0xff] }
 0xa4c   :  { %v2966_v33 = vpop.eup %2965  ;;  %2822 = vmatpush1.bf16.msk.msra.mxu0 %vm3337_vm8, %v3021_v55 }
 0xa4d   :  { %v2968_v50 = vpop.eup %2967  ;;  %2823 = vmatprep.subr.bf16.mxu0 %v3014_v11 }
 0xa4e   :  { %2267 = vmatprep.mubr.msk.f32.mxu0 %vm280_vm7, %v2968_v50 }
 0xa4f   :  { %1621 = vmatmul.mubr.f32.gmra.mrb[44].mxu0 %v2966_v33 }
 0xa50   :  { %v2970_v35 = vpop.eup %2969  ;;  %2825 = vmatpush1.bf16.msk.msra.mxu0 %vm3360_vm9, %v3021_v55 }
 0xa51   :  { %v2972_v53 = vpop.eup %2971  ;;  %2826 = vmatprep.subr.bf16.mxu0 %v3014_v11 }
 0xa52   :  { %2268 = vmatprep.mubr.msk.f32.mxu0 %vm280_vm7, %v2972_v53 }
 0xa53   :  { %1626 = vmatmul.mubr.f32.gmra.mrb[46].mxu0 %v2970_v35 }
 0xa54   :  { %v2974_v34 = vpop.eup %2973  ;;  %2828 = vmatpush1.bf16.msk.msra.mxu0 %vm3373_vm10, %v3021_v55 }
 0xa55   :  { %v2976_v13 = vpop.eup %2975  ;;  %2829 = vmatprep.subr.bf16.mxu0 %v3014_v11 }
 0xa56   :  { %2269 = vmatprep.mubr.msk.f32.mxu0 %vm280_vm7, %v2976_v13 }
 0xa57   :  { %1631 = vmatmul.mubr.f32.gmra.mrb[48].mxu0 %v2974_v34 }
 0xa58   :  { %2831 = vmatpush1.bf16.msk.msra.mxu0 %vm3373_vm10, %v3021_v55  ;;  %2290 = vmatprep.mubr.msk.f32.mxu0 %vm280_vm7, %v2960_v48  ;;  %v1981_v48 = vld [vmem:[%s4015_s8] sm:$0xff] }
 0xa59   :  { %2832 = vmatprep.subr.bf16.mxu0 %v3014_v11  ;;  %v2866_v57 = vpack.c.bf16 %v1982_v22, %v1981_v48 }
 0xa5c   :  { %2834 = vmatpush1.bf16.msk.msra.mxu0 %vm3395_vm11, %v3021_v55 }
 0xa5d   :  { %2835 = vmatprep.subr.bf16.mxu0 %v3014_v11 }
 0xa60   :  { %2837 = vmatpush1.bf16.msk.msra.mxu0 %vm3395_vm11, %v3021_v55 }
 0xa61   :  { %2838 = vmatprep.subr.bf16.mxu0 %v3014_v11 }
 0xa64   :  { %2840 = vmatpush1.bf16.msk.msra.mxu0 %vm3418_vm12, %v3021_v55 }
 0xa65   :  { %2841 = vmatprep.subr.bf16.mxu0 %v3014_v11 }
 0xa68   :  { %2843 = vmatpush1.bf16.msk.msra.mxu0 %vm3428_vm13, %v3021_v55 }
 0xa69   :  { %2844 = vmatprep.subr.bf16.mxu0 %v3014_v11 }
 0xa6c   :  { %2846 = vmatpush1.bf16.msk.msra.mxu0 %vm3428_vm13, %v3021_v55  ;;  %v2851_v55 = vpack.c.bf16 %v2298_v16, %v2297_v7 }
 0xa6d   :  { %2853 = vmatprep.subr.bf16.mxu0 %v3014_v11 }
 0xa6e   :  { %2852 = vmatpush3.bf16.msra.mxu1 %v2851_v55 }
 0xa6f   :  { %1701 = vmatmul.mubr.f32.vlgmr.msra.gmra.mrb[50].mxu0 %v2958_v44  ;;  %2865 = vmatprep.subr.bf16.mxu1 %v3014_v11  ;;  %v2312_v44 = vld [vmem:[%s4013_s6 + $0x70] sm:$0xff] }
 0xa70   :  { %2291 = vmatprep.mubr.msk.f32.mxu0 %vm280_vm7, %v2964_v24  ;;  %2855 = vmatpush3.bf16.msra.mxu0 %v2854_v43  ;;  %v2863_v28 = vpack.c.bf16 %v2313_v46, %v2312_v44 }
 0xa71   :  { %2856 = vmatprep.subr.bf16.mxu0 %v3014_v11 }
 0xa73   :  { %1706 = vmatmul.mubr.f32.gmra.mrb[52].mxu0 %v2962_v4  ;;  %v1984_v4 = vld [vmem:[%s4015_s8 + $0x18] sm:$0xff] }
 0xa74   :  { %2292 = vmatprep.mubr.msk.f32.mxu0 %vm280_vm7, %v2968_v50  ;;  %2858 = vmatpush3.bf16.msra.mxu0 %v2857_v0  ;;  %v2869_v12 = vpack.c.bf16 %v1984_v4, %v1983_v51 }
 0xa75   :  { %2859 = vmatprep.subr.bf16.mxu0 %v3014_v11 }
 0xa77   :  { %1711 = vmatmul.mubr.f32.gmra.mrb[54].mxu0 %v2966_v33 }
 0xa78   :  { %2293 = vmatprep.mubr.msk.f32.mxu0 %vm280_vm7, %v2972_v53  ;;  %2861 = vmatpush3.bf16.msra.mxu0 %v2860_v1 }
 0xa79   :  { %2862 = vmatprep.subr.bf16.mxu0 %v3014_v11 }
 0xa7b   :  { %1716 = vmatmul.mubr.f32.gmra.mrb[56].mxu0 %v2970_v35 }
 0xa7c   :  { %2294 = vmatprep.mubr.msk.f32.mxu0 %vm280_vm7, %v2976_v13  ;;  %2864 = vmatpush3.bf16.msra.mxu0 %v2863_v28 }
 0xa7f   :  { %1721 = vmatmul.mubr.f32.gmra.mrb[58].mxu0 %v2974_v34 }
 0xa80   :  { %2559 = vmatprep.mubr.msk.f32.mxu0 %vm3013_vm0, %v3012_v6 }
 0xb1a   :  { %v1612_v3 = vpop.f32.mrb[40].mxu0 }
 0xb1b   :  { %v1614_v5 = vpop.f32.mrb[41].mxu0 }
 0xb1e   :  { %v1617_v36 = vpop.f32.mrb[42].mxu0 }
 0xb1f   :  { %v1619_v23 = vpop.f32.mrb[43].mxu0 }
 0xb22   :  { %v1622_v52 = vpop.f32.mrb[44].mxu0 }
 0xb23   :  { %v1624_v9 = vpop.f32.mrb[45].mxu0 }
 0xb26   :  { %v1627_v10 = vpop.f32.mrb[46].mxu0 }
 0xb27   :  { %v1629_v14 = vpop.f32.mrb[47].mxu0 }
 0xb2a   :  { %v1632_v45 = vpop.f32.mrb[48].mxu0 }
 0xb2b   :  { %v1634_v47 = vpop.f32.mrb[49].mxu0 }
 0xb42   :  { %v1702_v18 = vpop.f32.mrb[50].mxu0 }
 0xb43   :  { %2977 = vrcp.f32 %v1702_v18  ;;  %v1704_v19 = vpop.f32.mrb[51].mxu0 }
 0xb46   :  { %v1707_v20 = vpop.f32.mrb[52].mxu0 }
 0xb47   :  { %2979 = vrcp.f32 %v1707_v20  ;;  %v1709_v26 = vpop.f32.mrb[53].mxu0 }
 0xb4a   :  { %v1712_v56 = vpop.f32.mrb[54].mxu0 }
 0xb4b   :  { %2981 = vrcp.f32 %v1712_v56  ;;  %v1714_v61 = vpop.f32.mrb[55].mxu0 }
 0xb4d   :  { %v2978_v58 = vpop.eup %2977 }
 0xb4e   :  { %v1731_v15 = vmul.f32 %v2978_v58, %v1612_v3  ;;  %v1717_v31 = vpop.f32.mrb[56].mxu0 }
 0xb4f   :  { %2983 = vrcp.f32 %v1717_v31  ;;  %v1719_v32 = vpop.f32.mrb[57].mxu0 }
 0xb50   :  { %2529 = vmatmul.mubr.msk.f32.vlgmr.msra.gmra.mrb[50].mxu1 %vm280_vm7, %v1731_v15 }
 0xb51   :  { %v2980_v37 = vpop.eup %2979  ;;  %2531 = vmatprep.mubr.msk.f32.mxu1 %vm3013_vm0, %v3012_v6  ;;  %2867 = vmatpush3.bf16.msra.mxu1 %v2866_v57 }
 0xb52   :  { %v1722_v17 = vpop.f32.mrb[58].mxu0  ;;  %v1732_v62 = vmul.f32 %v2980_v37, %v1617_v36  ;;  %2868 = vmatprep.subr.bf16.mxu1 %v3014_v11 }
 0xb53   :  { %2985 = vrcp.f32 %v1722_v17  ;;  %v1724_v2 = vpop.f32.mrb[59].mxu0 }
 0xb54   :  { %2532 = vmatmul.mubr.msk.f32.gmra.mrb[52].mxu1 %vm280_vm7, %v1732_v62 }
 0xb55   :  { %v2982_v38 = vpop.eup %2981  ;;  %2534 = vmatprep.mubr.msk.f32.mxu1 %vm3013_vm0, %v3012_v6  ;;  %2870 = vmatpush3.bf16.msra.mxu1 %v2869_v12 }
 0xb56   :  { %v1733_v42 = vmul.f32 %v2982_v38, %v1622_v52 }
 0xb58   :  { %2535 = vmatmul.mubr.msk.f32.gmra.mrb[54].mxu1 %vm280_vm7, %v1733_v42 }
 0xb59   :  { %v2984_v49 = vpop.eup %2983  ;;  %2537 = vmatprep.mubr.msk.f32.mxu1 %vm3013_vm0, %v3012_v6 }
 0xb5a   :  { %v1734_v54 = vmul.f32 %v2984_v49, %v1627_v10 }
 0xb5c   :  { %2538 = vmatmul.mubr.msk.f32.gmra.mrb[56].mxu1 %vm280_vm7, %v1734_v54 }
 0xb5d   :  { %v2986_v25 = vpop.eup %2985  ;;  %2540 = vmatprep.mubr.msk.f32.mxu1 %vm3013_vm0, %v3012_v6 }
 0xb5e   :  { %v1735_v40 = vmul.f32 %v2986_v25, %v1632_v45 }
 0xb60   :  { %2541 = vmatmul.mubr.msk.f32.gmra.mrb[58].mxu1 %vm280_vm7, %v1735_v40 }
 0xb61   :  { %2582 = vmatprep.mubr.msk.f32.mxu1 %vm3013_vm0, %v3012_v6 }
 0xc23   :  { %v1830_v24 = vpop.f32.mrb[50].mxu1 }
 0xc24   :  { %v1831_v33 = vadd.f32 %v2300_v21, %v1830_v24  ;;  %v2530_v50 = vpop.f32.mrb[51].mxu1 }
 0xc26   :  { %v1854_v35 = vmax.f32 %v1831_v33, 0.0 }
 0xc27   :  { %v1835_v53 = vpop.f32.mrb[52].mxu1 }
 0xc28   :  { %v1836_v34 = vadd.f32 %v2300_v21, %v1835_v53  ;;  %v2533_v13 = vpop.f32.mrb[53].mxu1  ;;  %2560 = vmatmul.mubr.msk.f32.vlgmr.msra.gmra.mrb[60].mxu0 %vm1017_vm3, %v1854_v35 }
 0xc29   :  { %2562 = vmatprep.mubr.msk.f32.mxu0 %vm3013_vm0, %v3012_v6 }
 0xc2a   :  { %v1855_v29 = vmax.f32 %v1836_v34, 0.0 }
 0xc2b   :  { %v1840_v30 = vpop.f32.mrb[54].mxu1 }
 0xc2c   :  { %v1841_v11 = vadd.f32 %v2300_v21, %v1840_v30  ;;  %v2536_v8 = vpop.f32.mrb[55].mxu1  ;;  %2563 = vmatmul.mubr.msk.f32.gmra.mrb[62].mxu0 %vm1017_vm3, %v1855_v29 }
 0xc2d   :  { %2565 = vmatprep.mubr.msk.f32.mxu0 %vm3013_vm0, %v3012_v6 }
 0xc2e   :  { %v1856_v7 = vmax.f32 %v1841_v11, 0.0 }
 0xc2f   :  { %v1845_v16 = vpop.f32.mrb[56].mxu1 }
 0xc30   :  { %v1846_v55 = vadd.f32 %v2300_v21, %v1845_v16  ;;  %v2539_v59 = vpop.f32.mrb[57].mxu1  ;;  %2566 = vmatmul.mubr.msk.f32.gmra.mrb[64].mxu0 %vm1017_vm3, %v1856_v7 }
 0xc31   :  { %2568 = vmatprep.mubr.msk.f32.mxu0 %vm3013_vm0, %v3012_v6 }
 0xc32   :  { %v1857_v39 = vmax.f32 %v1846_v55, 0.0 }
 0xc33   :  { %v1850_v60 = vpop.f32.mrb[58].mxu1 }
 0xc34   :  { %v1851_v43 = vadd.f32 %v2300_v21, %v1850_v60  ;;  %v2542_v63 = vpop.f32.mrb[59].mxu1  ;;  %2569 = vmatmul.mubr.msk.f32.gmra.mrb[66].mxu0 %vm1017_vm3, %v1857_v39 }
 0xc35   :  { %2571 = vmatprep.mubr.msk.f32.mxu0 %vm3013_vm0, %v3012_v6 }
 0xc36   :  { %v1858_v0 = vmax.f32 %v1851_v43, 0.0 }
 0xc38   :  { %2572 = vmatmul.mubr.msk.f32.gmra.mrb[68].mxu0 %vm1017_vm3, %v1858_v0 }
 0xcfb   :  { %v1957_v41 = vpop.f32.mrb[60].mxu0 }
 0xcfc   :  { %v1958_v1 = vadd.f32 %v2315_v27, %v1957_v41  ;;  %v2561_v3 = vpop.f32.mrb[61].mxu0 }
 0xcfe   :  { %2583 = vmatmul.mubr.msk.f32.vlgmr.msra.gmra.mrb[60].mxu1 %vm280_vm7, %v1958_v1 }
 0xcff   :  { %v1962_v5 = vpop.f32.mrb[62].mxu0  ;;  %2585 = vmatprep.mubr.msk.f32.mxu1 %vm3013_vm0, %v3012_v6 }
 0xd00   :  { %v1963_v36 = vadd.f32 %v2315_v27, %v1962_v5  ;;  %v2564_v23 = vpop.f32.mrb[63].mxu0 }
 0xd02   :  { %2586 = vmatmul.mubr.msk.f32.gmra.mrb[62].mxu1 %vm280_vm7, %v1963_v36 }
 0xd03   :  { %v1967_v52 = vpop.f32.mrb[64].mxu0  ;;  %2588 = vmatprep.mubr.msk.f32.mxu1 %vm3013_vm0, %v3012_v6 }
 0xd04   :  { %v1968_v9 = vadd.f32 %v2315_v27, %v1967_v52  ;;  %v2567_v10 = vpop.f32.mrb[65].mxu0 }
 0xd06   :  { %2589 = vmatmul.mubr.msk.f32.gmra.mrb[64].mxu1 %vm280_vm7, %v1968_v9 }
 0xd07   :  { %v1972_v14 = vpop.f32.mrb[66].mxu0  ;;  %2591 = vmatprep.mubr.msk.f32.mxu1 %vm3013_vm0, %v3012_v6 }
 0xd08   :  { %v1973_v45 = vadd.f32 %v2315_v27, %v1972_v14  ;;  %v2570_v47 = vpop.f32.mrb[67].mxu0 }
 0xd0a   :  { %2592 = vmatmul.mubr.msk.f32.gmra.mrb[66].mxu1 %vm280_vm7, %v1973_v45 }
 0xd0b   :  { %v1977_v18 = vpop.f32.mrb[68].mxu0  ;;  %2594 = vmatprep.mubr.msk.f32.mxu1 %vm3013_vm0, %v3012_v6 }
 0xd0c   :  { %v1978_v19 = vadd.f32 %v2315_v27, %v1977_v18  ;;  %v2573_v20 = vpop.f32.mrb[69].mxu0 }
 0xd0e   :  { %2595 = vmatmul.mubr.msk.f32.gmra.mrb[68].mxu1 %vm280_vm7, %v1978_v19 }
 0xdd1   :  { %v2066_v26 = vpop.f32.mrb[60].mxu1 }
 0xdd2   :  { %2090 = vst [vmem:[#allocation2] sm:$0xff] %v2066_v26  ;;  %v2584_v56 = vpop.f32.mrb[61].mxu1 }
 0xdd5   :  { %v2071_v61 = vpop.f32.mrb[62].mxu1 }
 0xdd6   :  { %2091 = vst [vmem:[#allocation2 + $0x8] sm:$0xff] %v2071_v61  ;;  %v2587_v58 = vpop.f32.mrb[63].mxu1 }
 0xdd9   :  { %v2076_v15 = vpop.f32.mrb[64].mxu1 }
 0xdda   :  { %2092 = vst [vmem:[#allocation2 + $0x10] sm:$0xff] %v2076_v15  ;;  %v2590_v31 = vpop.f32.mrb[65].mxu1 }
 0xddd   :  { %v2081_v32 = vpop.f32.mrb[66].mxu1 }
 0xdde   :  { %2093 = vst [vmem:[#allocation2 + $0x18] sm:$0xff] %v2081_v32  ;;  %v2593_v37 = vpop.f32.mrb[67].mxu1 }
 0xde1   :  { %v2086_v6 = vpop.f32.mrb[68].mxu1 }
 0xde2   :  { %2094 = vst [vmem:[#allocation2 + $0x20] sm:$0xff] %v2086_v6  ;;  %v2596_v17 = vpop.f32.mrb[69].mxu1 }
 0xde3   :  { %2998 = shalt.err (!%p2995_p4)
}
 0xde4   :  { %s2999_s16 = scalar_lea.hbm %s4016_s9, 640 }
 0xde5   :  { %p3000_p5 = scmp.ne.s32.totalorder %s4016_s9, %s2999_s16  ;;  %p3003_p6 = scmp.lt.u32.totalorder %s2999_s16, %s4016_s9 }
 0xde7   :  { %p3005_p7 = pnand %p3003_p6, %p3000_p5 }
 0xde9   :  { %3008 = shalt.err (!%p3005_p7)
}
 0xdea   :  { %s3023_s4 = smov 128   ;;  %s3024_s20 = smov 8  }
 0xdeb   :  { %2106 = dma.vmem_to_hbm [thread:$0]  %s2101_s11, 640, %s4016_s9, [#allocation3], %s3023_s4, %s3023_s4, %s3024_s20  }
 0xdec   :  { %3009 = dma.done.wait [#allocation3], 640  }
 0xded   :  { %3010 = vsyncadd [#allocation3], 4294966656 }
 0xdee   :  { %2110 = vsyncpa [#allocation3], 1 }

</bundles_post_ra>
